<compile_context>
chip_gen: v7x
topology: tpu7x:2x2x1
jax: 0.10.0
libtpu: 0.0.40
codegen_flags: <defaults>
</compile_context>

<pallas_src>
import functools

import jax
import jax.numpy as jnp
from jax.experimental import pallas as pl
from jax.experimental.pallas import tpu as pltpu

LANE = 128


def _round_up(n, m):
    return ((n + m - 1) // m) * m


# ----------------------------------------------------------------------------
# Fused Pallas kernel: the entire GCN_air forward in one launch.
# ----------------------------------------------------------------------------

def _fused_gcn_air_kernel(
    x_ref, a_ref,                       # (M, Fp), (M, M)
    in_w_ref, in_b_ref,                 # (Fp, Hp), (1, Hp)
    bn0_s_ref, bn0_b_ref,               # (1, Hp), (1, Hp)
    w1_ref, w2_ref,                     # (1, Hp), (1, Hp)   attention weight rows
    att_b_ref,                          # (1,) in SMEM       attention bias scalar
    conv_w_ref, conv_b_ref,             # (L, Hp, Hp), (L, 1, Hp)
    bn_s_ref, bn_b_ref,                 # (L, 1, Hp), (L, 1, Hp)
    out_w_ref, out_b_ref,               # (Hp, Cp), (1, Cp)
    o_ref,                              # (M, Cp)
    *, num_layers, num_classes):
    f32 = jnp.float32

    x = x_ref[...]
    a = a_ref[...]

    # x = bn(input_fc(x)) : matmul with fused bias + BN-affine epilogue.
    h = jnp.dot(x, in_w_ref[...], preferred_element_type=f32) + in_b_ref[...]
    h = h * bn0_s_ref[...] + bn0_b_ref[...]
    x_input = h

    w1 = w1_ref[...]            # (1, Hp) -> applied to x
    w2 = w2_ref[...]            # (1, Hp) -> applied to x_input
    att_b = att_b_ref[0]        # scalar from SMEM

    def gate_relu(h):
        # alpha = sigmoid([h, x_input] @ w_att + b)
        # N=1 matmuls replaced by VPU broadcast-multiply + lane reduction.
        logit = jnp.sum(h * w1 + x_input * w2, axis=-1, keepdims=True) + att_b
        alpha = 1.0 / (1.0 + jnp.exp(-logit))          # EUP exp + reciprocal
        mixed = (1.0 - alpha) * h + alpha * x_input
        return jnp.maximum(mixed, 0.0)                 # relu (dropout = identity)

    for i in range(num_layers):
        h = gate_relu(h)
        # GCNConv: A_norm @ (h @ W) + b, hW never leaves vregs/VMEM.
        hw = jnp.dot(h, conv_w_ref[i], preferred_element_type=f32)
        h = jnp.dot(a, hw, preferred_element_type=f32) + conv_b_ref[i]
        # BatchNorm1d (eval) fused as matmul epilogue.
        h = h * bn_s_ref[i] + bn_b_ref[i]

    # final gate, out_fc, log_softmax (all fused).
    h = gate_relu(h)
    logits = jnp.dot(h, out_w_ref[...], preferred_element_type=f32) + out_b_ref[...]

    # Mask padded class lanes so they do not perturb the softmax.
    lane = jax.lax.broadcasted_iota(jnp.int32, logits.shape, 1)
    logits = jnp.where(lane < num_classes, logits, jnp.float32(-1e30))

    m = jnp.max(logits, axis=-1, keepdims=True)
    shifted = logits - m
    lse = jnp.log(jnp.sum(jnp.exp(shifted), axis=-1, keepdims=True))
    o_ref[...] = (shifted - lse).astype(o_ref.dtype)


# ----------------------------------------------------------------------------
# Wrapper: pad to lane-dense (128) shapes, single pallas_call, slice result.
# ----------------------------------------------------------------------------

def gcn_air_forward(x, a_norm, params, *, num_layers, num_classes):
    M, F = x.shape
    H = params["in_w"].shape[1]
    Fp = _round_up(F, LANE)
    Hp = _round_up(H, LANE)
    Cp = _round_up(num_classes, LANE)

    eps = params["bn_eps"]
    inv_std = jnp.float32(1.0 / jnp.sqrt(1.0 + eps))   # running mean=0, var=1

    def pad_last(v, n):
        return jnp.pad(v, [(0, 0)] * (v.ndim - 1) + [(0, n - v.shape[-1])])

    x_p = pad_last(x.astype(jnp.float32), Fp)
    a_p = a_norm.astype(jnp.float32)

    in_w = jnp.pad(params["in_w"], ((0, Fp - F), (0, Hp - H)))
    in_b = pad_last(params["in_b"].reshape(1, H), Hp)
    bn0_s = pad_last((params["bn0_gamma"] * inv_std).reshape(1, H), Hp)
    bn0_b = pad_last(params["bn0_beta"].reshape(1, H), Hp)

    w1 = pad_last(params["att_w"][:H].reshape(1, H), Hp)
    w2 = pad_last(params["att_w"][H:].reshape(1, H), Hp)
    att_b = params["att_b"].reshape(1).astype(jnp.float32)

    conv_w = jnp.stack([jnp.pad(c["w"], ((0, Hp - H), (0, Hp - H)))
                        for c in params["convs"]])
    conv_b = jnp.stack([pad_last(c["b"].reshape(1, H), Hp)
                        for c in params["convs"]])
    bn_s = jnp.stack([pad_last((b["gamma"] * inv_std).reshape(1, H), Hp)
                      for b in params["bns"]])
    bn_b = jnp.stack([pad_last(b["beta"].reshape(1, H), Hp)
                      for b in params["bns"]])

    out_w = jnp.pad(params["out_w"], ((0, Hp - H), (0, Cp - num_classes)))
    out_b = pad_last(params["out_b"].reshape(1, num_classes), Cp)

    kernel = functools.partial(_fused_gcn_air_kernel,
                               num_layers=num_layers, num_classes=num_classes)

    vmem = lambda: pl.BlockSpec(memory_space=pltpu.MemorySpace.VMEM)
    smem = lambda: pl.BlockSpec(memory_space=pltpu.MemorySpace.SMEM)

    out_p = pl.pallas_call(
        kernel,
        out_shape=jax.ShapeDtypeStruct((M, Cp), jnp.float32),
        in_specs=[vmem(), vmem(),                       # x, a_norm
                  vmem(), vmem(), vmem(), vmem(),       # in_w, in_b, bn0_s, bn0_b
                  vmem(), vmem(), smem(),               # w1, w2, att_b (scalar)
                  vmem(), vmem(), vmem(), vmem(),       # conv_w, conv_b, bn_s, bn_b
                  vmem(), vmem()],                      # out_w, out_b
        out_specs=vmem(),
    )(x_p, a_p, in_w, in_b, bn0_s, bn0_b,
      w1, w2, att_b,
      conv_w, conv_b, bn_s, bn_b,
      out_w, out_b)

    return out_p[:, :num_classes]


# ----------------------------------------------------------------------------
# Pure-JAX reference (unpadded) for correctness checking.
# ----------------------------------------------------------------------------

def gcn_air_reference(x, a_norm, params, *, num_layers):
    eps = params["bn_eps"]
    H = params["in_w"].shape[1]
    inv_std = 1.0 / jnp.sqrt(1.0 + eps)

    h = x @ params["in_w"] + params["in_b"]
    h = h * (params["bn0_gamma"] * inv_std) + params["bn0_beta"]
    x_input = h

    w1 = params["att_w"][:H]
    w2 = params["att_w"][H:]
    att_b = params["att_b"][0]

    def gate_relu(h):
        logit = h @ w1 + x_input @ w2 + att_b
        alpha = jax.nn.sigmoid(logit)[:, None]
        return jnp.maximum((1.0 - alpha) * h + alpha * x_input, 0.0)

    for i in range(num_layers):
        h = gate_relu(h)
        h = a_norm @ (h @ params["convs"][i]["w"]) + params["convs"][i]["b"]
        h = h * (params["bns"][i]["gamma"] * inv_std) + params["bns"][i]["beta"]

    h = gate_relu(h)
    logits = h @ params["out_w"] + params["out_b"]
    return jax.nn.log_softmax(logits, axis=-1)


# ----------------------------------------------------------------------------
# Parameters / graph construction
# ----------------------------------------------------------------------------

def init_params(key, *, num_features, hidden, num_layers, num_classes):
    """Deterministic synthetic parameter init (shapes match the nn.Module)."""
    ks = jax.random.split(key, 8 + 4 * num_layers)
    ki = iter(range(len(ks)))
    nrm = lambda k, shape, s=0.1: (s * jax.random.normal(k, shape)).astype(jnp.float32)

    params = {
        "in_w": nrm(ks[next(ki)], (num_features, hidden)),
        "in_b": nrm(ks[next(ki)], (hidden,)),
        "bn0_gamma": 1.0 + nrm(ks[next(ki)], (hidden,)),
        "bn0_beta": nrm(ks[next(ki)], (hidden,)),
        "att_w": nrm(ks[next(ki)], (2 * hidden,)),
        "att_b": nrm(ks[next(ki)], (1,)),
        "convs": [],
        "bns": [],
    }
    for _ in range(num_layers):
        params["convs"].append({
            "w": nrm(ks[next(ki)], (hidden, hidden)),
            "b": nrm(ks[next(ki)], (hidden,)),
        })
        params["bns"].append({
            "gamma": 1.0 + nrm(ks[next(ki)], (hidden,)),
            "beta": nrm(ks[next(ki)], (hidden,)),
        })
    params["out_w"] = nrm(ks[next(ki)], (hidden, num_classes))
    params["out_b"] = nrm(ks[next(ki)], (num_classes,))
    params["bn_eps"] = 1e-5
    return params


def build_normalized_adjacency(key, num_nodes):
    """Dense D^-1/2 (A + I) D^-1/2 from a random symmetric adjacency."""
    a = (jax.random.uniform(key, (num_nodes, num_nodes)) < 0.08).astype(jnp.float32)
    a = jnp.maximum(a, a.T)
    a = a + jnp.eye(num_nodes, dtype=jnp.float32)
    deg = jnp.sum(a, axis=1)
    d_inv_sqrt = 1.0 / jnp.sqrt(deg)
    return a * d_inv_sqrt[:, None] * d_inv_sqrt[None, :]


# ----------------------------------------------------------------------------
# Main
# ----------------------------------------------------------------------------

if __name__ == "__main__":
    NUM_NODES = 64
    HIDDEN = 32
    NUM_FEATURES = HIDDEN        # required so cat([x, x_input]) matches lr_att_p
    NUM_LAYERS = 3
    NUM_CLASSES = 8

    key = jax.random.PRNGKey(0)
    k_x, k_adj, k_p = jax.random.split(key, 3)

    x = jax.random.normal(k_x, (NUM_NODES, NUM_FEATURES), dtype=jnp.float32)
    a_norm = build_normalized_adjacency(k_adj, NUM_NODES)
    params = init_params(k_p, num_features=NUM_FEATURES, hidden=HIDDEN,
                         num_layers=NUM_LAYERS, num_classes=NUM_CLASSES)

    fwd = jax.jit(functools.partial(gcn_air_forward,
                                    num_layers=NUM_LAYERS,
                                    num_classes=NUM_CLASSES))
    out = jax.block_until_ready(fwd(x, a_norm, params))

    ref = jax.block_until_ready(
        gcn_air_reference(x, a_norm, params, num_layers=NUM_LAYERS))

    assert out.shape == (NUM_NODES, NUM_CLASSES)
    assert bool(jnp.all(jnp.isfinite(out)))
    # log_softmax rows must sum to ~1 in prob space
    assert bool(jnp.allclose(jnp.sum(jnp.exp(out), axis=1), 1.0, atol=1e-4))
    # match the pure-JAX reference
    assert bool(jnp.allclose(out, ref, atol=1e-3, rtol=1e-3))

    print("KERNEL_OK")
</pallas_src>

<mosaic_0001>
module attributes {stable_mosaic.version = 11 : i64} {
  func.func @_fused_gcn_air_kernel(%arg0: memref<64x128xf32, #tpu.memory_space<vmem>>, %arg1: memref<64x64xf32, #tpu.memory_space<vmem>>, %arg2: memref<128x128xf32, #tpu.memory_space<vmem>>, %arg3: memref<1x128xf32, #tpu.memory_space<vmem>>, %arg4: memref<1x128xf32, #tpu.memory_space<vmem>>, %arg5: memref<1x128xf32, #tpu.memory_space<vmem>>, %arg6: memref<1x128xf32, #tpu.memory_space<vmem>>, %arg7: memref<1x128xf32, #tpu.memory_space<vmem>>, %arg8: memref<1xf32, #tpu.memory_space<smem>>, %arg9: memref<3x128x128xf32, #tpu.memory_space<vmem>>, %arg10: memref<3x1x128xf32, #tpu.memory_space<vmem>>, %arg11: memref<3x1x128xf32, #tpu.memory_space<vmem>>, %arg12: memref<3x1x128xf32, #tpu.memory_space<vmem>>, %arg13: memref<128x128xf32, #tpu.memory_space<vmem>>, %arg14: memref<1x128xf32, #tpu.memory_space<vmem>>, %arg15: memref<64x128xf32, #tpu.memory_space<vmem>>) attributes {dimension_semantics = [], scalar_prefetch = 0 : i64, scratch_operands = 0 : i64, tpu.core_type = #tpu.core_type<tc>} {
    %c0 = arith.constant 0 : index
    %c0_0 = arith.constant 0 : index
    %0 = vector.load %arg0[%c0, %c0_0] : memref<64x128xf32, #tpu.memory_space<vmem>>, vector<64x128xf32>
    %c0_1 = arith.constant 0 : index
    %c0_2 = arith.constant 0 : index
    %1 = vector.load %arg1[%c0_1, %c0_2] : memref<64x64xf32, #tpu.memory_space<vmem>>, vector<64x64xf32>
    %c0_3 = arith.constant 0 : index
    %c0_4 = arith.constant 0 : index
    %2 = vector.load %arg2[%c0_3, %c0_4] : memref<128x128xf32, #tpu.memory_space<vmem>>, vector<128x128xf32>
    %cst = arith.constant dense<0.000000e+00> : vector<64x128xf32>
    %3 = tpu.matmul %0, %2, %cst {dimension_numbers = #tpu.dot_dimension_numbers<[1], [0], [0], [1], [0, 0, 1, 1], [], []>} : vector<64x128xf32>, vector<128x128xf32>, vector<64x128xf32> -> vector<64x128xf32>
    %c0_5 = arith.constant 0 : index
    %c0_6 = arith.constant 0 : index
    %4 = vector.load %arg3[%c0_5, %c0_6] : memref<1x128xf32, #tpu.memory_space<vmem>>, vector<1x128xf32>
    %5 = vector.broadcast %4 : vector<1x128xf32> to vector<64x128xf32>
    %6 = arith.addf %3, %5 : vector<64x128xf32>
    %c0_7 = arith.constant 0 : index
    %c0_8 = arith.constant 0 : index
    %7 = vector.load %arg4[%c0_7, %c0_8] : memref<1x128xf32, #tpu.memory_space<vmem>>, vector<1x128xf32>
    %8 = vector.broadcast %7 : vector<1x128xf32> to vector<64x128xf32>
    %9 = arith.mulf %6, %8 : vector<64x128xf32>
    %c0_9 = arith.constant 0 : index
    %c0_10 = arith.constant 0 : index
    %10 = vector.load %arg5[%c0_9, %c0_10] : memref<1x128xf32, #tpu.memory_space<vmem>>, vector<1x128xf32>
    %11 = vector.broadcast %10 : vector<1x128xf32> to vector<64x128xf32>
    %12 = arith.addf %9, %11 : vector<64x128xf32>
    %c0_11 = arith.constant 0 : index
    %c0_12 = arith.constant 0 : index
    %13 = vector.load %arg6[%c0_11, %c0_12] : memref<1x128xf32, #tpu.memory_space<vmem>>, vector<1x128xf32>
    %c0_13 = arith.constant 0 : index
    %c0_14 = arith.constant 0 : index
    %14 = vector.load %arg7[%c0_13, %c0_14] : memref<1x128xf32, #tpu.memory_space<vmem>>, vector<1x128xf32>
    %c0_15 = arith.constant 0 : index
    %15 = memref.load %arg8[%c0_15] : memref<1xf32, #tpu.memory_space<smem>>
    %16 = vector.broadcast %13 : vector<1x128xf32> to vector<64x128xf32>
    %17 = arith.mulf %12, %16 : vector<64x128xf32>
    %18 = vector.broadcast %14 : vector<1x128xf32> to vector<64x128xf32>
    %19 = arith.mulf %12, %18 : vector<64x128xf32>
    %20 = arith.addf %17, %19 : vector<64x128xf32>
    %cst_16 = arith.constant dense<0.000000e+00> : vector<64xf32>
    %21 = vector.multi_reduction <add>, %20, %cst_16 [1] : vector<64x128xf32> to vector<64xf32>
    %22 = vector.shape_cast %21 : vector<64xf32> to vector<64x1xf32>
    %23 = vector.broadcast %15 : f32 to vector<64x1xf32>
    %24 = arith.addf %22, %23 : vector<64x1xf32>
    %cst_17 = arith.constant 0.000000e+00 : f32
    %25 = vector.broadcast %cst_17 : f32 to vector<64x1xf32>
    %26 = arith.subf %25, %24 : vector<64x1xf32>
    %27 = math.exp %26 : vector<64x1xf32>
    %cst_18 = arith.constant 1.000000e+00 : f32
    %28 = vector.broadcast %cst_18 : f32 to vector<64x1xf32>
    %29 = arith.addf %28, %27 : vector<64x1xf32>
    %cst_19 = arith.constant 1.000000e+00 : f32
    %30 = vector.broadcast %cst_19 : f32 to vector<64x1xf32>
    %31 = arith.divf %30, %29 : vector<64x1xf32>
    %cst_20 = arith.constant 1.000000e+00 : f32
    %32 = vector.broadcast %cst_20 : f32 to vector<64x1xf32>
    %33 = arith.subf %32, %31 : vector<64x1xf32>
    %34 = vector.broadcast %33 : vector<64x1xf32> to vector<64x128xf32>
    %35 = arith.mulf %34, %12 : vector<64x128xf32>
    %36 = vector.broadcast %31 : vector<64x1xf32> to vector<64x128xf32>
    %37 = arith.mulf %36, %12 : vector<64x128xf32>
    %38 = arith.addf %35, %37 : vector<64x128xf32>
    %cst_21 = arith.constant 0.000000e+00 : f32
    %39 = vector.broadcast %cst_21 : f32 to vector<64x128xf32>
    %40 = arith.maximumf %38, %39 : vector<64x128xf32>
    %c0_22 = arith.constant 0 : index
    %c0_23 = arith.constant 0 : index
    %c0_24 = arith.constant 0 : index
    %41 = vector.load %arg9[%c0_22, %c0_23, %c0_24] : memref<3x128x128xf32, #tpu.memory_space<vmem>>, vector<1x128x128xf32>
    %42 = vector.shape_cast %41 : vector<1x128x128xf32> to vector<128x128xf32>
    %cst_25 = arith.constant dense<0.000000e+00> : vector<64x128xf32>
    %43 = tpu.matmul %40, %42, %cst_25 {dimension_numbers = #tpu.dot_dimension_numbers<[1], [0], [0], [1], [0, 0, 1, 1], [], []>} : vector<64x128xf32>, vector<128x128xf32>, vector<64x128xf32> -> vector<64x128xf32>
    %cst_26 = arith.constant dense<0.000000e+00> : vector<64x128xf32>
    %44 = tpu.matmul %1, %43, %cst_26 {dimension_numbers = #tpu.dot_dimension_numbers<[1], [0], [0], [1], [0, 0, 1, 1], [], []>} : vector<64x64xf32>, vector<64x128xf32>, vector<64x128xf32> -> vector<64x128xf32>
    %c0_27 = arith.constant 0 : index
    %c0_28 = arith.constant 0 : index
    %c0_29 = arith.constant 0 : index
    %45 = vector.load %arg10[%c0_27, %c0_28, %c0_29] : memref<3x1x128xf32, #tpu.memory_space<vmem>>, vector<1x1x128xf32>
    %46 = vector.shape_cast %45 : vector<1x1x128xf32> to vector<1x128xf32>
    %47 = vector.broadcast %46 : vector<1x128xf32> to vector<64x128xf32>
    %48 = arith.addf %44, %47 : vector<64x128xf32>
    %c0_30 = arith.constant 0 : index
    %c0_31 = arith.constant 0 : index
    %c0_32 = arith.constant 0 : index
    %49 = vector.load %arg11[%c0_30, %c0_31, %c0_32] : memref<3x1x128xf32, #tpu.memory_space<vmem>>, vector<1x1x128xf32>
    %50 = vector.shape_cast %49 : vector<1x1x128xf32> to vector<1x128xf32>
    %51 = vector.broadcast %50 : vector<1x128xf32> to vector<64x128xf32>
    %52 = arith.mulf %48, %51 : vector<64x128xf32>
    %c0_33 = arith.constant 0 : index
    %c0_34 = arith.constant 0 : index
    %c0_35 = arith.constant 0 : index
    %53 = vector.load %arg12[%c0_33, %c0_34, %c0_35] : memref<3x1x128xf32, #tpu.memory_space<vmem>>, vector<1x1x128xf32>
    %54 = vector.shape_cast %53 : vector<1x1x128xf32> to vector<1x128xf32>
    %55 = vector.broadcast %54 : vector<1x128xf32> to vector<64x128xf32>
    %56 = arith.addf %52, %55 : vector<64x128xf32>
    %57 = vector.broadcast %13 : vector<1x128xf32> to vector<64x128xf32>
    %58 = arith.mulf %56, %57 : vector<64x128xf32>
    %59 = vector.broadcast %14 : vector<1x128xf32> to vector<64x128xf32>
    %60 = arith.mulf %12, %59 : vector<64x128xf32>
    %61 = arith.addf %58, %60 : vector<64x128xf32>
    %cst_36 = arith.constant dense<0.000000e+00> : vector<64xf32>
    %62 = vector.multi_reduction <add>, %61, %cst_36 [1] : vector<64x128xf32> to vector<64xf32>
    %63 = vector.shape_cast %62 : vector<64xf32> to vector<64x1xf32>
    %64 = vector.broadcast %15 : f32 to vector<64x1xf32>
    %65 = arith.addf %63, %64 : vector<64x1xf32>
    %cst_37 = arith.constant 0.000000e+00 : f32
    %66 = vector.broadcast %cst_37 : f32 to vector<64x1xf32>
    %67 = arith.subf %66, %65 : vector<64x1xf32>
    %68 = math.exp %67 : vector<64x1xf32>
    %cst_38 = arith.constant 1.000000e+00 : f32
    %69 = vector.broadcast %cst_38 : f32 to vector<64x1xf32>
    %70 = arith.addf %69, %68 : vector<64x1xf32>
    %cst_39 = arith.constant 1.000000e+00 : f32
    %71 = vector.broadcast %cst_39 : f32 to vector<64x1xf32>
    %72 = arith.divf %71, %70 : vector<64x1xf32>
    %cst_40 = arith.constant 1.000000e+00 : f32
    %73 = vector.broadcast %cst_40 : f32 to vector<64x1xf32>
    %74 = arith.subf %73, %72 : vector<64x1xf32>
    %75 = vector.broadcast %74 : vector<64x1xf32> to vector<64x128xf32>
    %76 = arith.mulf %75, %56 : vector<64x128xf32>
    %77 = vector.broadcast %72 : vector<64x1xf32> to vector<64x128xf32>
    %78 = arith.mulf %77, %12 : vector<64x128xf32>
    %79 = arith.addf %76, %78 : vector<64x128xf32>
    %cst_41 = arith.constant 0.000000e+00 : f32
    %80 = vector.broadcast %cst_41 : f32 to vector<64x128xf32>
    %81 = arith.maximumf %79, %80 : vector<64x128xf32>
    %c1 = arith.constant 1 : index
    %c0_42 = arith.constant 0 : index
    %c0_43 = arith.constant 0 : index
    %82 = vector.load %arg9[%c1, %c0_42, %c0_43] : memref<3x128x128xf32, #tpu.memory_space<vmem>>, vector<1x128x128xf32>
    %83 = vector.shape_cast %82 : vector<1x128x128xf32> to vector<128x128xf32>
    %cst_44 = arith.constant dense<0.000000e+00> : vector<64x128xf32>
    %84 = tpu.matmul %81, %83, %cst_44 {dimension_numbers = #tpu.dot_dimension_numbers<[1], [0], [0], [1], [0, 0, 1, 1], [], []>} : vector<64x128xf32>, vector<128x128xf32>, vector<64x128xf32> -> vector<64x128xf32>
    %cst_45 = arith.constant dense<0.000000e+00> : vector<64x128xf32>
    %85 = tpu.matmul %1, %84, %cst_45 {dimension_numbers = #tpu.dot_dimension_numbers<[1], [0], [0], [1], [0, 0, 1, 1], [], []>} : vector<64x64xf32>, vector<64x128xf32>, vector<64x128xf32> -> vector<64x128xf32>
    %c1_46 = arith.constant 1 : index
    %c0_47 = arith.constant 0 : index
    %c0_48 = arith.constant 0 : index
    %86 = vector.load %arg10[%c1_46, %c0_47, %c0_48] : memref<3x1x128xf32, #tpu.memory_space<vmem>>, vector<1x1x128xf32>
    %87 = vector.shape_cast %86 : vector<1x1x128xf32> to vector<1x128xf32>
    %88 = vector.broadcast %87 : vector<1x128xf32> to vector<64x128xf32>
    %89 = arith.addf %85, %88 : vector<64x128xf32>
    %c1_49 = arith.constant 1 : index
    %c0_50 = arith.constant 0 : index
    %c0_51 = arith.constant 0 : index
    %90 = vector.load %arg11[%c1_49, %c0_50, %c0_51] : memref<3x1x128xf32, #tpu.memory_space<vmem>>, vector<1x1x128xf32>
    %91 = vector.shape_cast %90 : vector<1x1x128xf32> to vector<1x128xf32>
    %92 = vector.broadcast %91 : vector<1x128xf32> to vector<64x128xf32>
    %93 = arith.mulf %89, %92 : vector<64x128xf32>
    %c1_52 = arith.constant 1 : index
    %c0_53 = arith.constant 0 : index
    %c0_54 = arith.constant 0 : index
    %94 = vector.load %arg12[%c1_52, %c0_53, %c0_54] : memref<3x1x128xf32, #tpu.memory_space<vmem>>, vector<1x1x128xf32>
    %95 = vector.shape_cast %94 : vector<1x1x128xf32> to vector<1x128xf32>
    %96 = vector.broadcast %95 : vector<1x128xf32> to vector<64x128xf32>
    %97 = arith.addf %93, %96 : vector<64x128xf32>
    %98 = vector.broadcast %13 : vector<1x128xf32> to vector<64x128xf32>
    %99 = arith.mulf %97, %98 : vector<64x128xf32>
    %100 = vector.broadcast %14 : vector<1x128xf32> to vector<64x128xf32>
    %101 = arith.mulf %12, %100 : vector<64x128xf32>
    %102 = arith.addf %99, %101 : vector<64x128xf32>
    %cst_55 = arith.constant dense<0.000000e+00> : vector<64xf32>
    %103 = vector.multi_reduction <add>, %102, %cst_55 [1] : vector<64x128xf32> to vector<64xf32>
    %104 = vector.shape_cast %103 : vector<64xf32> to vector<64x1xf32>
    %105 = vector.broadcast %15 : f32 to vector<64x1xf32>
    %106 = arith.addf %104, %105 : vector<64x1xf32>
    %cst_56 = arith.constant 0.000000e+00 : f32
    %107 = vector.broadcast %cst_56 : f32 to vector<64x1xf32>
    %108 = arith.subf %107, %106 : vector<64x1xf32>
    %109 = math.exp %108 : vector<64x1xf32>
    %cst_57 = arith.constant 1.000000e+00 : f32
    %110 = vector.broadcast %cst_57 : f32 to vector<64x1xf32>
    %111 = arith.addf %110, %109 : vector<64x1xf32>
    %cst_58 = arith.constant 1.000000e+00 : f32
    %112 = vector.broadcast %cst_58 : f32 to vector<64x1xf32>
    %113 = arith.divf %112, %111 : vector<64x1xf32>
    %cst_59 = arith.constant 1.000000e+00 : f32
    %114 = vector.broadcast %cst_59 : f32 to vector<64x1xf32>
    %115 = arith.subf %114, %113 : vector<64x1xf32>
    %116 = vector.broadcast %115 : vector<64x1xf32> to vector<64x128xf32>
    %117 = arith.mulf %116, %97 : vector<64x128xf32>
    %118 = vector.broadcast %113 : vector<64x1xf32> to vector<64x128xf32>
    %119 = arith.mulf %118, %12 : vector<64x128xf32>
    %120 = arith.addf %117, %119 : vector<64x128xf32>
    %cst_60 = arith.constant 0.000000e+00 : f32
    %121 = vector.broadcast %cst_60 : f32 to vector<64x128xf32>
    %122 = arith.maximumf %120, %121 : vector<64x128xf32>
    %c2 = arith.constant 2 : index
    %c0_61 = arith.constant 0 : index
    %c0_62 = arith.constant 0 : index
    %123 = vector.load %arg9[%c2, %c0_61, %c0_62] : memref<3x128x128xf32, #tpu.memory_space<vmem>>, vector<1x128x128xf32>
    %124 = vector.shape_cast %123 : vector<1x128x128xf32> to vector<128x128xf32>
    %cst_63 = arith.constant dense<0.000000e+00> : vector<64x128xf32>
    %125 = tpu.matmul %122, %124, %cst_63 {dimension_numbers = #tpu.dot_dimension_numbers<[1], [0], [0], [1], [0, 0, 1, 1], [], []>} : vector<64x128xf32>, vector<128x128xf32>, vector<64x128xf32> -> vector<64x128xf32>
    %cst_64 = arith.constant dense<0.000000e+00> : vector<64x128xf32>
    %126 = tpu.matmul %1, %125, %cst_64 {dimension_numbers = #tpu.dot_dimension_numbers<[1], [0], [0], [1], [0, 0, 1, 1], [], []>} : vector<64x64xf32>, vector<64x128xf32>, vector<64x128xf32> -> vector<64x128xf32>
    %c2_65 = arith.constant 2 : index
    %c0_66 = arith.constant 0 : index
    %c0_67 = arith.constant 0 : index
    %127 = vector.load %arg10[%c2_65, %c0_66, %c0_67] : memref<3x1x128xf32, #tpu.memory_space<vmem>>, vector<1x1x128xf32>
    %128 = vector.shape_cast %127 : vector<1x1x128xf32> to vector<1x128xf32>
    %129 = vector.broadcast %128 : vector<1x128xf32> to vector<64x128xf32>
    %130 = arith.addf %126, %129 : vector<64x128xf32>
    %c2_68 = arith.constant 2 : index
    %c0_69 = arith.constant 0 : index
    %c0_70 = arith.constant 0 : index
    %131 = vector.load %arg11[%c2_68, %c0_69, %c0_70] : memref<3x1x128xf32, #tpu.memory_space<vmem>>, vector<1x1x128xf32>
    %132 = vector.shape_cast %131 : vector<1x1x128xf32> to vector<1x128xf32>
    %133 = vector.broadcast %132 : vector<1x128xf32> to vector<64x128xf32>
    %134 = arith.mulf %130, %133 : vector<64x128xf32>
    %c2_71 = arith.constant 2 : index
    %c0_72 = arith.constant 0 : index
    %c0_73 = arith.constant 0 : index
    %135 = vector.load %arg12[%c2_71, %c0_72, %c0_73] : memref<3x1x128xf32, #tpu.memory_space<vmem>>, vector<1x1x128xf32>
    %136 = vector.shape_cast %135 : vector<1x1x128xf32> to vector<1x128xf32>
    %137 = vector.broadcast %136 : vector<1x128xf32> to vector<64x128xf32>
    %138 = arith.addf %134, %137 : vector<64x128xf32>
    %139 = vector.broadcast %13 : vector<1x128xf32> to vector<64x128xf32>
    %140 = arith.mulf %138, %139 : vector<64x128xf32>
    %141 = vector.broadcast %14 : vector<1x128xf32> to vector<64x128xf32>
    %142 = arith.mulf %12, %141 : vector<64x128xf32>
    %143 = arith.addf %140, %142 : vector<64x128xf32>
    %cst_74 = arith.constant dense<0.000000e+00> : vector<64xf32>
    %144 = vector.multi_reduction <add>, %143, %cst_74 [1] : vector<64x128xf32> to vector<64xf32>
    %145 = vector.shape_cast %144 : vector<64xf32> to vector<64x1xf32>
    %146 = vector.broadcast %15 : f32 to vector<64x1xf32>
    %147 = arith.addf %145, %146 : vector<64x1xf32>
    %cst_75 = arith.constant 0.000000e+00 : f32
    %148 = vector.broadcast %cst_75 : f32 to vector<64x1xf32>
    %149 = arith.subf %148, %147 : vector<64x1xf32>
    %150 = math.exp %149 : vector<64x1xf32>
    %cst_76 = arith.constant 1.000000e+00 : f32
    %151 = vector.broadcast %cst_76 : f32 to vector<64x1xf32>
    %152 = arith.addf %151, %150 : vector<64x1xf32>
    %cst_77 = arith.constant 1.000000e+00 : f32
    %153 = vector.broadcast %cst_77 : f32 to vector<64x1xf32>
    %154 = arith.divf %153, %152 : vector<64x1xf32>
    %cst_78 = arith.constant 1.000000e+00 : f32
    %155 = vector.broadcast %cst_78 : f32 to vector<64x1xf32>
    %156 = arith.subf %155, %154 : vector<64x1xf32>
    %157 = vector.broadcast %156 : vector<64x1xf32> to vector<64x128xf32>
    %158 = arith.mulf %157, %138 : vector<64x128xf32>
    %159 = vector.broadcast %154 : vector<64x1xf32> to vector<64x128xf32>
    %160 = arith.mulf %159, %12 : vector<64x128xf32>
    %161 = arith.addf %158, %160 : vector<64x128xf32>
    %cst_79 = arith.constant 0.000000e+00 : f32
    %162 = vector.broadcast %cst_79 : f32 to vector<64x128xf32>
    %163 = arith.maximumf %161, %162 : vector<64x128xf32>
    %c0_80 = arith.constant 0 : index
    %c0_81 = arith.constant 0 : index
    %164 = vector.load %arg13[%c0_80, %c0_81] : memref<128x128xf32, #tpu.memory_space<vmem>>, vector<128x128xf32>
    %cst_82 = arith.constant dense<0.000000e+00> : vector<64x128xf32>
    %165 = tpu.matmul %163, %164, %cst_82 {dimension_numbers = #tpu.dot_dimension_numbers<[1], [0], [0], [1], [0, 0, 1, 1], [], []>} : vector<64x128xf32>, vector<128x128xf32>, vector<64x128xf32> -> vector<64x128xf32>
    %c0_83 = arith.constant 0 : index
    %c0_84 = arith.constant 0 : index
    %166 = vector.load %arg14[%c0_83, %c0_84] : memref<1x128xf32, #tpu.memory_space<vmem>>, vector<1x128xf32>
    %167 = vector.broadcast %166 : vector<1x128xf32> to vector<64x128xf32>
    %168 = arith.addf %165, %167 : vector<64x128xf32>
    %169 = tpu.iota {dimensions = array<i32: 1>} : vector<64x128xi32>
    %c8_i32 = arith.constant 8 : i32
    %170 = vector.broadcast %c8_i32 : i32 to vector<64x128xi32>
    %171 = arith.cmpi slt, %169, %170 : vector<64x128xi32>
    %cst_85 = arith.constant -1.000000e+30 : f32
    %172 = vector.broadcast %cst_85 : f32 to vector<64x128xf32>
    %173 = arith.select %171, %168, %172 : vector<64x128xi1>, vector<64x128xf32>
    %cst_86 = arith.constant dense<0xFF800000> : vector<64xf32>
    %174 = vector.multi_reduction <maximumf>, %173, %cst_86 [1] : vector<64x128xf32> to vector<64xf32>
    %175 = vector.shape_cast %174 : vector<64xf32> to vector<64x1xf32>
    %176 = vector.broadcast %175 : vector<64x1xf32> to vector<64x128xf32>
    %177 = arith.subf %173, %176 : vector<64x128xf32>
    %178 = math.exp %177 : vector<64x128xf32>
    %cst_87 = arith.constant dense<0.000000e+00> : vector<64xf32>
    %179 = vector.multi_reduction <add>, %178, %cst_87 [1] : vector<64x128xf32> to vector<64xf32>
    %180 = vector.shape_cast %179 : vector<64xf32> to vector<64x1xf32>
    %181 = math.log %180 : vector<64x1xf32>
    %182 = vector.broadcast %181 : vector<64x1xf32> to vector<64x128xf32>
    %183 = arith.subf %177, %182 : vector<64x128xf32>
    %c0_88 = arith.constant 0 : index
    %c0_89 = arith.constant 0 : index
    %184 = vector.load %arg15[%c0_88, %c0_89] : memref<64x128xf32, #tpu.memory_space<vmem>>, vector<64x128xf32>
    tpu.vector_store %arg15[%c0_88, %c0_89], %183 {strides = array<i32>} : memref<64x128xf32, #tpu.memory_space<vmem>>, vector<64x128xf32>,
    return
  }
}

</mosaic_0001>

<bundles_post_ra>
// kernel: gcn_air_forward.1
= control target key start
LH: loop header
LB: loop body
LE: loop exit
PB: predicated region body
PF: predicated region fallthrough
CT: control target
= control target key end

     0   :  { %vm505_vm0 = vcmask 523264   ;;  %s3565_s2 = inlined_call_operand.vmem [shape: f32[128,128], index: 2, kind: input, shape index: {}]   ;;  %s3566_s0 = inlined_call_operand.vmem [shape: f32[64,128], index: 0, kind: input, shape index: {}]   ;;  %s3567_s3 = inlined_call_operand.vmem [shape: f32[1,128], index: 3, kind: input, shape index: {}]   ;;  %s3568_s4 = inlined_call_operand.vmem [shape: f32[1,128], index: 4, kind: input, shape index: {}]   ;;  %s3569_s5 = inlined_call_operand.vmem [shape: f32[1,128], index: 5, kind: input, shape index: {}]   ;;  %s3570_s6 = inlined_call_operand.vmem [shape: f32[1,128], index: 6, kind: input, shape index: {}]   ;;  %s3571_s7 = inlined_call_operand.vmem [shape: f32[1,128], index: 7, kind: input, shape index: {}]   ;;  %s3572_s9 = inlined_call_operand.vmem [shape: f32[3,128,128], index: 9, kind: input, shape index: {}]   ;;  %s3573_s8 = inlined_call_operand.<no memory space> [shape: f32[1], index: 8, kind: input, shape index: {}]   ;;  %s3574_s1 = inlined_call_operand.vmem [shape: f32[64,64], index: 1, kind: input, shape index: {}]   ;;  %s3575_s10 = inlined_call_operand.vmem [shape: f32[3,1,128], index: 10, kind: input, shape index: {}]   ;;  %s3576_s11 = inlined_call_operand.vmem [shape: f32[3,1,128], index: 11, kind: input, shape index: {}]   ;;  %s3577_s12 = inlined_call_operand.vmem [shape: f32[3,1,128], index: 12, kind: input, shape index: {}]   ;;  %s3578_s13 = inlined_call_operand.vmem [shape: f32[128,128], index: 13, kind: input, shape index: {}]   ;;  %s3579_s14 = inlined_call_operand.vmem [shape: f32[1,128], index: 14, kind: input, shape index: {}]   ;;  %s3580_s15 = inlined_call_operand.vmem [shape: f32[64,128], index: 15, kind: output, shape index: {}]  }
   0x1   :  { %v67_v0 = vld [vmem:[%s3565_s2] sm:$0xff]  ;;  %v68_v1 = vld [vmem:[%s3565_s2 + $0x8] sm:$0xff]  ;;  %v69_v2 = vld [vmem:[%s3565_s2 + $0x10] sm:$0xff] }
   0x2   :  { %v2363_v3 = vpack.c.bf16 %v68_v1, %v67_v0  ;;  %v70_v4 = vld [vmem:[%s3565_s2 + $0x18] sm:$0xff]  ;;  %v71_v6 = vld [vmem:[%s3565_s2 + $0x20] sm:$0xff]  ;;  %v72_v7 = vld [vmem:[%s3565_s2 + $0x28] sm:$0xff] }
   0x3   :  { %v2367_v5 = vpack.c.bf16 %v70_v4, %v69_v2  ;;  %v2371_v8 = vpack.c.bf16 %v72_v7, %v71_v6  ;;  %v51_v9 = vld [vmem:[%s3566_s0] sm:$0xff]  ;;  %v73_v10 = vld [vmem:[%s3565_s2 + $0x30] sm:$0xff]  ;;  %v74_v11 = vld [vmem:[%s3565_s2 + $0x38] sm:$0xff] }
   0x4   :  { %2364 = vmatprep.subr.bf16.mxu0 %v2363_v3  ;;  %2091 = vmatprep.mubr.f32.mxu0 %v51_v9  ;;  %v2375_v12 = vpack.c.bf16 %v74_v11, %v73_v10  ;;  %v75_v13 = vld [vmem:[%s3565_s2 + $0x40] sm:$0xff]  ;;  %v76_v14 = vld [vmem:[%s3565_s2 + $0x48] sm:$0xff]  ;;  %v77_v16 = vld [vmem:[%s3565_s2 + $0x50] sm:$0xff] }
   0x5   :  { %2366 = vmatpush3.bf16.msra.mxu0 %v2363_v3  ;;  %v2379_v15 = vpack.c.bf16 %v76_v14, %v75_v13  ;;  %v78_v17 = vld [vmem:[%s3565_s2 + $0x58] sm:$0xff]  ;;  %v79_v19 = vld [vmem:[%s3565_s2 + $0x60] sm:$0xff]  ;;  %v80_v20 = vld [vmem:[%s3565_s2 + $0x68] sm:$0xff] }
   0x6   :  { %2368 = vmatprep.subr.bf16.mxu0 %v2367_v5  ;;  %v2383_v18 = vpack.c.bf16 %v78_v17, %v77_v16  ;;  %v2387_v21 = vpack.c.bf16 %v80_v20, %v79_v19  ;;  %v81_v22 = vld [vmem:[%s3565_s2 + $0x70] sm:$0xff]  ;;  %v82_v23 = vld [vmem:[%s3565_s2 + $0x78] sm:$0xff]  ;;  %v52_v25 = vld [vmem:[%s3566_s0 + $0x8] sm:$0xff] }
   0x7   :  { %v2391_v24 = vpack.c.bf16 %v82_v23, %v81_v22  ;;  %v53_v26 = vld [vmem:[%s3566_s0 + $0x10] sm:$0xff]  ;;  %v54_v27 = vld [vmem:[%s3566_s0 + $0x18] sm:$0xff]  ;;  %v55_v28 = vld [vmem:[%s3566_s0 + $0x20] sm:$0xff] }
   0x8   :  { %v56_v29 = vld [vmem:[%s3566_s0 + $0x28] sm:$0xff]  ;;  %v57_v30 = vld [vmem:[%s3566_s0 + $0x30] sm:$0xff]  ;;  %v58_v31 = vld [vmem:[%s3566_s0 + $0x38] sm:$0xff] }
   0x9   :  { %2370 = vmatpush3.bf16.msra.mxu0 %v2367_v5  ;;  %v1814_v32 = vld [vmem:[%s3567_s3] ss:$0 sm:$0xff] }
   0xa   :  { %2372 = vmatprep.subr.bf16.mxu0 %v2371_v8  ;;  %v1815_v34 = vld [vmem:[%s3568_s4] ss:$0 sm:$0xff] }
   0xb   :  { %v1816_v37 = vld [vmem:[%s3569_s5] ss:$0 sm:$0xff] }
   0xc   :  { %v2898_v45 = vld [vmem:[%s3570_s6] ss:$0 sm:$0xff] }
   0xd   :  { %2374 = vmatpush3.bf16.msra.mxu0 %v2371_v8  ;;  %v1818_v46 = vld [vmem:[%s3571_s7] ss:$0 sm:$0xff] }
   0xe   :  { %2376 = vmatprep.subr.bf16.mxu0 %v2375_v12 }
  0x11   :  { %2378 = vmatpush3.bf16.msra.mxu0 %v2375_v12 }
  0x12   :  { %2380 = vmatprep.subr.bf16.mxu0 %v2379_v15 }
  0x15   :  { %2382 = vmatpush3.bf16.msra.mxu0 %v2379_v15 }
  0x16   :  { %2384 = vmatprep.subr.bf16.mxu0 %v2383_v18 }
  0x19   :  { %2386 = vmatpush3.bf16.msra.mxu0 %v2383_v18 }
  0x1a   :  { %2388 = vmatprep.subr.bf16.mxu0 %v2387_v21 }
  0x1d   :  { %2390 = vmatpush3.bf16.msra.mxu0 %v2387_v21 }
  0x1e   :  { %2392 = vmatprep.subr.bf16.mxu0 %v2391_v24 }
  0x21   :  { %2394 = vmatpush3.bf16.msra.mxu0 %v2391_v24 }
  0x24   :  { %2092 = vmatmul.mubr.f32.vlgmr.msra.gmra.mrb[0].mxu0 %v52_v25 }
  0x25   :  { %2094 = vmatprep.mubr.f32.mxu0 %v53_v26 }
  0x28   :  { %2095 = vmatmul.mubr.f32.gmra.mrb[2].mxu0 %v54_v27 }
  0x29   :  { %2097 = vmatprep.mubr.f32.mxu0 %v55_v28 }
  0x2c   :  { %2098 = vmatmul.mubr.f32.gmra.mrb[4].mxu0 %v56_v29  ;;  %v377_v29 = vld [vmem:[%s3572_s9] sm:$0xff] }
  0x2d   :  { %2100 = vmatprep.mubr.f32.mxu0 %v57_v30  ;;  %v378_v30 = vld [vmem:[%s3572_s9 + $0x8] sm:$0xff] }
  0x30   :  { %2101 = vmatmul.mubr.f32.gmra.mrb[6].mxu0 %v58_v31  ;;  %v2395_v31 = vpack.c.bf16 %v378_v30, %v377_v29 }
  0x32   :  { %2396 = vmatprep.subr.bf16.mxu1 %v2395_v31 }
  0x33   :  { %2398 = vmatpush3.bf16.msra.mxu1 %v2395_v31 }
  0xf7   :  { %v2093_v33 = vpop.f32.mrb[0].mxu0 }
  0xf8   :  { %v162_v35 = vadd.f32 %v2093_v33, %v1814_v32  ;;  %v156_v36 = vpop.f32.mrb[1].mxu0  ;;  %v380_v33 = vld [vmem:[%s3572_s9 + $0x18] sm:$0xff] }
  0xf9   :  { %v157_v38 = vadd.f32 %v1814_v32, %v156_v36  ;;  %v382_v36 = vld [vmem:[%s3572_s9 + $0x28] sm:$0xff] }
  0xfa   :  { %v203_v39 = vmul.f32 %v1815_v34, %v162_v35  ;;  %v381_v35 = vld [vmem:[%s3572_s9 + $0x20] sm:$0xff] }
  0xfb   :  { %v202_v40 = vmul.f32 %v1815_v34, %v157_v38  ;;  %v2096_v41 = vpop.f32.mrb[2].mxu0  ;;  %v383_v38 = vld [vmem:[%s3572_s9 + $0x30] sm:$0xff] }
  0xfc   :  { %v2893_v42 = vadd.f32 %v1816_v37, %v203_v39  ;;  %v172_v43 = vadd.f32 %v2096_v41, %v1814_v32  ;;  %v166_v44 = vpop.f32.mrb[3].mxu0  ;;  %v384_v39 = vld [vmem:[%s3572_s9 + $0x38] sm:$0xff]  ;;  %v385_v41 = vld [vmem:[%s3572_s9 + $0x40] sm:$0xff] }
  0xfd   :  { %v2903_v47 = vadd.f32 %v1816_v37, %v202_v40  ;;  %v167_v48 = vadd.f32 %v1814_v32, %v166_v44  ;;  %v2407_v40 = vpack.c.bf16 %v384_v39, %v383_v38 }
  0xfe   :  { %v205_v49 = vmul.f32 %v1815_v34, %v172_v43  ;;  %v235_v57 = vmul.f32 %v2898_v45, %v2893_v42  ;;  %v2918_v61 = vmul.f32 %v1818_v46, %v2893_v42  ;;  %v386_v43 = vld [vmem:[%s3572_s9 + $0x48] sm:$0xff] }
  0xff   :  { %v204_v50 = vmul.f32 %v1815_v34, %v167_v48  ;;  %v2099_v51 = vpop.f32.mrb[4].mxu0  ;;  %v234_v52 = vmul.f32 %v2898_v45, %v2903_v47  ;;  %v2908_v53 = vmul.f32 %v1818_v46, %v2903_v47  ;;  %v2411_v44 = vpack.c.bf16 %v386_v43, %v385_v41  ;;  %v388_v48 = vld [vmem:[%s3572_s9 + $0x58] sm:$0xff] }
 0x100   :  { %v2910_v54 = vadd.f32 %v1816_v37, %v205_v49  ;;  %v182_v55 = vadd.f32 %v2099_v51, %v1814_v32  ;;  %v176_v56 = vpop.f32.mrb[5].mxu0  ;;  %v257_v11 = vadd.f32 %v2918_v61, %v235_v57  ;;  %v390_v51 = vld [vmem:[%s3572_s9 + $0x68] sm:$0xff] }
 0x101   :  { %v2914_v58 = vadd.f32 %v1816_v37, %v204_v50  ;;  %v177_v59 = vadd.f32 %v1814_v32, %v176_v56  ;;  %v256_v60 = vadd.f32 %v2908_v53, %v234_v52  ;;  %v389_v50 = vld [vmem:[%s3572_s9 + $0x60] sm:$0xff]  ;;  %v392_v56 = vld [vmem:[%s3572_s9 + $0x78] sm:$0xff] }
 0x102   :  { %v207_v62 = vmul.f32 %v1815_v34, %v182_v55  ;;  %v237_v6 = vmul.f32 %v2898_v45, %v2910_v54  ;;  %v2930_v7 = vmul.f32 %v1818_v46, %v2910_v54  ;;  %v2419_v52 = vpack.c.bf16 %v390_v51, %v389_v50  ;;  %v391_v55 = vld [vmem:[%s3572_s9 + $0x70] sm:$0xff] }
 0x103   :  { %v206_v63 = vmul.f32 %v1815_v34, %v177_v59  ;;  %v2102_v0 = vpop.f32.mrb[6].mxu0  ;;  %264 = vadd.xlane.f32.xlu0 %v256_v60  ;;  %v236_v1 = vmul.f32 %v2898_v45, %v2914_v58  ;;  %v2923_v2 = vmul.f32 %v1818_v46, %v2914_v58  ;;  %v2423_v57 = vpack.c.bf16 %v392_v56, %v391_v55 }
 0x104   :  { %v2925_v3 = vadd.f32 %v1816_v37, %v207_v62  ;;  %v192_v4 = vadd.f32 %v2102_v0, %v1814_v32  ;;  %v186_v5 = vpop.f32.mrb[7].mxu0  ;;  %v259_v16 = vadd.f32 %v2930_v7, %v237_v6  ;;  %v3016_v59 = vstv %s3573_s8 }
 0x105   :  { %v2932_v8 = vadd.f32 %v1816_v37, %v206_v63  ;;  %v187_v9 = vadd.f32 %v1814_v32, %v186_v5  ;;  %v258_v10 = vadd.f32 %v2923_v2, %v236_v1  ;;  %v379_v32 = vld [vmem:[%s3572_s9 + $0x10] sm:$0xff] }
 0x106   :  { %v209_v12 = vmul.f32 %v1815_v34, %v192_v4  ;;  %v239_v17 = vmul.f32 %v2898_v45, %v2925_v3  ;;  %v2950_v21 = vmul.f32 %v1818_v46, %v2925_v3 }
 0x107   :  { %v208_v13 = vmul.f32 %v1815_v34, %v187_v9  ;;  %268 = vadd.xlane.f32.xlu1 %v258_v10  ;;  %266 = vadd.xlane.f32.xlu0 %v257_v11  ;;  %v238_v14 = vmul.f32 %v2898_v45, %v2932_v8  ;;  %v2939_v15 = vmul.f32 %v1818_v46, %v2932_v8 }
 0x108   :  { %v2944_v18 = vadd.f32 %v1816_v37, %v209_v12  ;;  %v261_v24 = vadd.f32 %v2950_v21, %v239_v17  ;;  %v2399_v34 = vpack.c.bf16 %v380_v33, %v379_v32 }
 0x109   :  { %v2946_v19 = vadd.f32 %v1816_v37, %v208_v13  ;;  %v260_v20 = vadd.f32 %v2939_v15, %v238_v14  ;;  %v2403_v37 = vpack.c.bf16 %v382_v36, %v381_v35 }
 0x10a   :  { %v241_v26 = vmul.f32 %v2898_v45, %v2944_v18  ;;  %v2962_v27 = vmul.f32 %v1818_v46, %v2944_v18  ;;  %2400 = vmatprep.subr.bf16.mxu1 %v2399_v34 }
 0x10b   :  { %270 = vadd.xlane.f32.xlu1 %v259_v16  ;;  %272 = vadd.xlane.f32.xlu0 %v260_v20  ;;  %v240_v22 = vmul.f32 %v2898_v45, %v2946_v19  ;;  %v2955_v23 = vmul.f32 %v1818_v46, %v2946_v19  ;;  %v387_v46 = vld [vmem:[%s3572_s9 + $0x50] sm:$0xff] }
 0x10c   :  { %v263_v28 = vadd.f32 %v2962_v27, %v241_v26  ;;  %2402 = vmatpush3.bf16.msra.mxu1 %v2399_v34  ;;  %v2415_v49 = vpack.c.bf16 %v388_v48, %v387_v46 }
 0x10d   :  { %v262_v25 = vadd.f32 %v2955_v23, %v240_v22  ;;  %2404 = vmatprep.subr.bf16.mxu1 %v2403_v37 }
 0x10f   :  { %274 = vadd.xlane.f32.xlu1 %v261_v24  ;;  %276 = vadd.xlane.f32.xlu0 %v262_v25 }
 0x110   :  { %2406 = vmatpush3.bf16.msra.mxu1 %v2403_v37 }
 0x111   :  { %2408 = vmatprep.subr.bf16.mxu1 %v2407_v40 }
 0x113   :  { %278 = vadd.xlane.f32.xlu1 %v263_v28 }
 0x114   :  { %2410 = vmatpush3.bf16.msra.mxu1 %v2407_v40 }
 0x115   :  { %2412 = vmatprep.subr.bf16.mxu1 %v2411_v44 }
 0x118   :  { %2414 = vmatpush3.bf16.msra.mxu1 %v2411_v44 }
 0x119   :  { %2416 = vmatprep.subr.bf16.mxu1 %v2415_v49 }
 0x11c   :  { %2418 = vmatpush3.bf16.msra.mxu1 %v2415_v49 }
 0x11d   :  { %2420 = vmatprep.subr.bf16.mxu1 %v2419_v52 }
 0x120   :  { %2422 = vmatpush3.bf16.msra.mxu1 %v2419_v52 }
 0x121   :  { %2424 = vmatprep.subr.bf16.mxu1 %v2423_v57 }
 0x124   :  { %2426 = vmatpush3.bf16.msra.mxu1 %v2423_v57 }
 0x190   :  { %v265_v60 = vpop.xlane.xlu0 %264 }
 0x191   :  { %v281_v62 = vadd.f32 %v3016_v59, %v265_v60 }
 0x193   :  { %v289_v63 = vsub.f32 0.0, %v281_v62 }
 0x194   :  { %v269_v0 = vpop.xlane.xlu1 %268  ;;  %v267_v1 = vpop.xlane.xlu0 %266 }
 0x195   :  { %v297_v4 = vmul.f32 1.442695, %v289_v63  ;;  %v283_v5 = vadd.f32 %v3016_v59, %v269_v0  ;;  %v282_v6 = vadd.f32 %v3016_v59, %v267_v1 }
 0x197   :  { %2571 = vpow2.f32 %v297_v4  ;;  %v291_v9 = vsub.f32 0.0, %v283_v5  ;;  %v290_v10 = vsub.f32 0.0, %v282_v6 }
 0x198   :  { %v271_v11 = vpop.xlane.xlu1 %270  ;;  %v273_v12 = vpop.xlane.xlu0 %272 }
 0x199   :  { %v301_v13 = vmul.f32 1.442695, %v291_v9  ;;  %v299_v14 = vmul.f32 1.442695, %v290_v10  ;;  %v284_v16 = vadd.f32 %v3016_v59, %v271_v11  ;;  %v285_v17 = vadd.f32 %v3016_v59, %v273_v12 }
 0x19b   :  { %2573 = vpow2.f32 %v301_v13  ;;  %v292_v20 = vsub.f32 0.0, %v284_v16  ;;  %v293_v22 = vsub.f32 0.0, %v285_v17 }
 0x19c   :  { %2575 = vpow2.f32 %v299_v14  ;;  %v275_v24 = vpop.xlane.xlu1 %274  ;;  %v277_v25 = vpop.xlane.xlu0 %276 }
 0x19d   :  { %v303_v26 = vmul.f32 1.442695, %v292_v20  ;;  %v305_v28 = vmul.f32 1.442695, %v293_v22  ;;  %v286_v29 = vadd.f32 %v3016_v59, %v275_v24  ;;  %v287_v30 = vadd.f32 %v3016_v59, %v277_v25 }
 0x19f   :  { %2577 = vpow2.f32 %v303_v26  ;;  %v294_v31 = vsub.f32 0.0, %v286_v29  ;;  %v295_v32 = vsub.f32 0.0, %v287_v30 }
 0x1a0   :  { %2579 = vpow2.f32 %v305_v28  ;;  %v279_v33 = vpop.xlane.xlu1 %278 }
 0x1a1   :  { %v2572_v34 = vpop.eup %2571  ;;  %v307_v35 = vmul.f32 1.442695, %v294_v31  ;;  %v309_v36 = vmul.f32 1.442695, %v295_v32  ;;  %v288_v37 = vadd.f32 %v3016_v59, %v279_v33 }
 0x1a2   :  { %v313_v38 = vadd.f32 1.0, %v2572_v34 }
 0x1a3   :  { %2581 = vpow2.f32 %v307_v35  ;;  %v296_v39 = vsub.f32 0.0, %v288_v37 }
 0x1a4   :  { %2583 = vrcp.f32 %v313_v38 }
 0x1a5   :  { %v2574_v40 = vpop.eup %2573  ;;  %2585 = vpow2.f32 %v309_v36  ;;  %v311_v41 = vmul.f32 1.442695, %v296_v39 }
 0x1a6   :  { %v2576_v43 = vpop.eup %2575  ;;  %v315_v44 = vadd.f32 1.0, %v2574_v40 }
 0x1a7   :  { %v314_v46 = vadd.f32 1.0, %v2576_v43  ;;  %2587 = vpow2.f32 %v311_v41 }
 0x1a8   :  { %2589 = vrcp.f32 %v315_v44 }
 0x1a9   :  { %v2578_v48 = vpop.eup %2577  ;;  %2591 = vrcp.f32 %v314_v46 }
 0x1aa   :  { %v2580_v49 = vpop.eup %2579  ;;  %v316_v50 = vadd.f32 1.0, %v2578_v48 }
 0x1ab   :  { %v317_v51 = vadd.f32 1.0, %v2580_v49 }
 0x1ac   :  { %2593 = vrcp.f32 %v316_v50 }
 0x1ad   :  { %v2582_v52 = vpop.eup %2581  ;;  %2595 = vrcp.f32 %v317_v51 }
 0x1ae   :  { %v2584_v55 = vpop.eup %2583  ;;  %v318_v56 = vadd.f32 1.0, %v2582_v52 }
 0x1af   :  { %v2586_v57 = vpop.eup %2585  ;;  %v337_v60 = vsub.f32 1.0, %v2584_v55  ;;  %v353_v1 = vmul.f32 %v2584_v55, %v2903_v47 }
 0x1b0   :  { %2597 = vrcp.f32 %v318_v56  ;;  %v319_v62 = vadd.f32 1.0, %v2586_v57 }
 0x1b1   :  { %v2588_v63 = vpop.eup %2587  ;;  %v345_v0 = vmul.f32 %v337_v60, %v2903_v47 }
 0x1b2   :  { %v2590_v4 = vpop.eup %2589  ;;  %2599 = vrcp.f32 %v319_v62  ;;  %v320_v5 = vadd.f32 1.0, %v2588_v63 }
 0x1b3   :  { %v2592_v6 = vpop.eup %2591  ;;  %v361_v9 = vadd.f32 %v353_v1, %v345_v0  ;;  %v339_v10 = vsub.f32 1.0, %v2590_v4  ;;  %v355_v14 = vmul.f32 %v2590_v4, %v2914_v58  ;;  %v3045_v1 = vld [vmem:[%s3574_s1] sm:$0xff] }
 0x1b4   :  { %2601 = vrcp.f32 %v320_v5  ;;  %v338_v11 = vsub.f32 1.0, %v2592_v6  ;;  %v354_v20 = vmul.f32 %v2592_v6, %v2893_v42  ;;  %2163 = vmatprep.mubr.msk.f32.mxu0 %vm505_vm0, %v3045_v1 }
 0x1b5   :  { %v369_v12 = vmax.f32 %v361_v9, 0.0  ;;  %v347_v13 = vmul.f32 %v339_v10, %v2914_v58 }
 0x1b6   :  { %v2594_v16 = vpop.eup %2593  ;;  %v346_v17 = vmul.f32 %v338_v11, %v2893_v42 }
 0x1b7   :  { %v2596_v22 = vpop.eup %2595  ;;  %2135 = vmatprep.mubr.f32.mxu1 %v369_v12  ;;  %v363_v24 = vadd.f32 %v355_v14, %v347_v13  ;;  %v340_v25 = vsub.f32 1.0, %v2594_v16  ;;  %v356_v31 = vmul.f32 %v2594_v16, %v2910_v54 }
 0x1b8   :  { %v362_v26 = vadd.f32 %v354_v20, %v346_v17  ;;  %v341_v28 = vsub.f32 1.0, %v2596_v22  ;;  %v357_v35 = vmul.f32 %v2596_v22, %v2932_v8  ;;  %v3052_v22 = vld [vmem:[%s3574_s1 + $0x8] sm:$0xff] }
 0x1b9   :  { %v371_v29 = vmax.f32 %v363_v24, 0.0  ;;  %v348_v30 = vmul.f32 %v340_v25, %v2910_v54  ;;  %v3057_v24 = vld [vmem:[%s3574_s1 + $0x10] sm:$0xff]  ;;  %v3066_v25 = vld [vmem:[%s3574_s1 + $0x18] sm:$0xff] }
 0x1ba   :  { %v2598_v32 = vpop.eup %2597  ;;  %v370_v33 = vmax.f32 %v362_v26, 0.0  ;;  %v349_v34 = vmul.f32 %v341_v28, %v2932_v8  ;;  %v3071_v26 = vld [vmem:[%s3574_s1 + $0x20] sm:$0xff]  ;;  %v3080_v28 = vld [vmem:[%s3574_s1 + $0x28] sm:$0xff] }
 0x1bb   :  { %v364_v36 = vadd.f32 %v356_v31, %v348_v30  ;;  %v342_v37 = vsub.f32 1.0, %v2598_v32  ;;  %v358_v43 = vmul.f32 %v2598_v32, %v2925_v3  ;;  %v3094_v30 = vld [vmem:[%s3574_s1 + $0x38] sm:$0xff]  ;;  %v1819_v31 = vld [vmem:[%s3575_s10] ss:$0 sm:$0xff] }
 0x1bc   :  { %v2600_v38 = vpop.eup %2599  ;;  %2136 = vmatmul.mubr.f32.vlgmr.msra.gmra.mrb[0].mxu1 %v370_v33  ;;  %v365_v39 = vadd.f32 %v357_v35, %v349_v34  ;;  %v1828_v33 = vld [vmem:[%s3576_s11] ss:$0 sm:$0xff] }
 0x1bd   :  { %2138 = vmatprep.mubr.f32.mxu1 %v371_v29  ;;  %v372_v40 = vmax.f32 %v364_v36, 0.0  ;;  %v350_v41 = vmul.f32 %v342_v37, %v2925_v3  ;;  %v343_v44 = vsub.f32 1.0, %v2600_v38  ;;  %v359_v51 = vmul.f32 %v2600_v38, %v2946_v19  ;;  %v3085_v29 = vld [vmem:[%s3574_s1 + $0x30] sm:$0xff]  ;;  %v1829_v36 = vld [vmem:[%s3577_s12] ss:$0 sm:$0xff] }
 0x1be   :  { %v2602_v46 = vpop.eup %2601  ;;  %v373_v48 = vmax.f32 %v365_v39, 0.0 }
 0x1bf   :  { %v366_v49 = vadd.f32 %v358_v43, %v350_v41  ;;  %v351_v50 = vmul.f32 %v343_v44, %v2946_v19  ;;  %v344_v52 = vsub.f32 1.0, %v2602_v46  ;;  %v360_v60 = vmul.f32 %v2602_v46, %v2944_v18 }
 0x1c0   :  { %2139 = vmatmul.mubr.f32.gmra.mrb[2].mxu1 %v372_v40 }
 0x1c1   :  { %2141 = vmatprep.mubr.f32.mxu1 %v373_v48  ;;  %v374_v55 = vmax.f32 %v366_v49, 0.0  ;;  %v367_v56 = vadd.f32 %v359_v51, %v351_v50  ;;  %v352_v57 = vmul.f32 %v344_v52, %v2944_v18 }
 0x1c3   :  { %v375_v62 = vmax.f32 %v367_v56, 0.0  ;;  %v368_v63 = vadd.f32 %v360_v60, %v352_v57 }
 0x1c4   :  { %2142 = vmatmul.mubr.f32.gmra.mrb[4].mxu1 %v374_v55 }
 0x1c5   :  { %2144 = vmatprep.mubr.f32.mxu1 %v375_v62  ;;  %v376_v0 = vmax.f32 %v368_v63, 0.0 }
 0x1c8   :  { %2145 = vmatmul.mubr.f32.gmra.mrb[6].mxu1 %v376_v0 }
 0x28f   :  { %v2137_v4 = vpop.f32.mrb[0].mxu1 }
 0x290   :  { %v459_v5 = vpop.f32.mrb[1].mxu1 }
 0x291   :  { %v2427_v6 = vpack.c.bf16 %v2137_v4, %v459_v5 }
 0x293   :  { %v2140_v9 = vpop.f32.mrb[2].mxu1  ;;  %2428 = vmatprep.subr.bf16.mxu0 %v2427_v6 }
 0x294   :  { %v469_v10 = vpop.f32.mrb[3].mxu1  ;;  %2430 = vmatpush3.bf16.msra.mxu0 %v2427_v6 }
 0x295   :  { %v2431_v11 = vpack.c.bf16 %v2140_v9, %v469_v10 }
 0x297   :  { %v2143_v12 = vpop.f32.mrb[4].mxu1  ;;  %2432 = vmatprep.subr.bf16.mxu0 %v2431_v11 }
 0x298   :  { %v479_v13 = vpop.f32.mrb[5].mxu1  ;;  %2434 = vmatpush3.bf16.msra.mxu0 %v2431_v11 }
 0x299   :  { %v2435_v14 = vpack.c.bf16 %v2143_v12, %v479_v13 }
 0x29b   :  { %v2146_v16 = vpop.f32.mrb[6].mxu1  ;;  %2436 = vmatprep.subr.bf16.mxu0 %v2435_v14 }
 0x29c   :  { %v489_v17 = vpop.f32.mrb[7].mxu1  ;;  %2438 = vmatpush3.bf16.msra.mxu0 %v2435_v14 }
 0x29d   :  { %v2439_v20 = vpack.c.bf16 %v2146_v16, %v489_v17 }
 0x29f   :  { %2440 = vmatprep.subr.bf16.mxu0 %v2439_v20 }
 0x2a0   :  { %2442 = vmatpush3.bf16.msra.mxu0 %v2439_v20 }
 0x2a3   :  { %2164 = vmatmul.mubr.msk.f32.vlgmr.msra.gmra.mrb[8].mxu0 %vm505_vm0, %v3052_v22 }
 0x2a4   :  { %2166 = vmatprep.mubr.msk.f32.mxu0 %vm505_vm0, %v3057_v24 }
 0x2a7   :  { %2167 = vmatmul.mubr.msk.f32.gmra.mrb[10].mxu0 %vm505_vm0, %v3066_v25 }
 0x2a8   :  { %2169 = vmatprep.mubr.msk.f32.mxu0 %vm505_vm0, %v3071_v26 }
 0x2ab   :  { %2170 = vmatmul.mubr.msk.f32.gmra.mrb[12].mxu0 %vm505_vm0, %v3080_v28 }
 0x2ac   :  { %2172 = vmatprep.mubr.msk.f32.mxu0 %vm505_vm0, %v3085_v29 }
 0x2af   :  { %2173 = vmatmul.mubr.msk.f32.gmra.mrb[14].mxu0 %vm505_vm0, %v3094_v30 }
 0x2b0   :  { %2235 = vmatprep.mubr.msk.f32.mxu0 %vm505_vm0, %v3045_v1 }
 0x376   :  { %v2165_v32 = vpop.f32.mrb[8].mxu0 }
 0x377   :  { %v602_v34 = vadd.f32 %v2165_v32, %v1819_v31  ;;  %v596_v35 = vpop.f32.mrb[9].mxu0 }
 0x378   :  { %v597_v37 = vadd.f32 %v1819_v31, %v596_v35 }
 0x379   :  { %v643_v38 = vmul.f32 %v1828_v33, %v602_v34 }
 0x37a   :  { %v642_v39 = vmul.f32 %v1828_v33, %v597_v37  ;;  %v2168_v40 = vpop.f32.mrb[10].mxu0 }
 0x37b   :  { %v3109_v41 = vadd.f32 %v1829_v36, %v643_v38  ;;  %v612_v43 = vadd.f32 %v2168_v40, %v1819_v31  ;;  %v606_v44 = vpop.f32.mrb[11].mxu0 }
 0x37c   :  { %v3111_v46 = vadd.f32 %v1829_v36, %v642_v39  ;;  %v607_v48 = vadd.f32 %v1819_v31, %v606_v44 }
 0x37d   :  { %v645_v49 = vmul.f32 %v1828_v33, %v612_v43  ;;  %v666_v50 = vmul.f32 %v2898_v45, %v3109_v41 }
 0x37e   :  { %v644_v51 = vmul.f32 %v1828_v33, %v607_v48  ;;  %v2171_v52 = vpop.f32.mrb[12].mxu0  ;;  %v665_v55 = vmul.f32 %v2898_v45, %v3111_v46 }
 0x37f   :  { %v3117_v56 = vadd.f32 %v1829_v36, %v645_v49  ;;  %v622_v57 = vadd.f32 %v2171_v52, %v1819_v31  ;;  %v616_v60 = vpop.f32.mrb[13].mxu0  ;;  %v674_v62 = vadd.f32 %v666_v50, %v2918_v61  ;;  %v1831_v50 = vld [vmem:[%s3572_s9 + $0x88] sm:$0xff]  ;;  %v1833_v52 = vld [vmem:[%s3572_s9 + $0x98] sm:$0xff] }
 0x380   :  { %v3120_v63 = vadd.f32 %v1829_v36, %v644_v51  ;;  %v617_v0 = vadd.f32 %v1819_v31, %v616_v60  ;;  %v673_v4 = vadd.f32 %v665_v55, %v2908_v53  ;;  %v1835_v60 = vld [vmem:[%s3572_s9 + $0xa8] sm:$0xff] }
 0x381   :  { %v647_v5 = vmul.f32 %v1828_v33, %v622_v57  ;;  %683 = vadd.xlane.f32.xlu1 %v674_v62  ;;  %v668_v6 = vmul.f32 %v2898_v45, %v3117_v56  ;;  %v1834_v57 = vld [vmem:[%s3572_s9 + $0xa0] sm:$0xff] }
 0x382   :  { %v646_v9 = vmul.f32 %v1828_v33, %v617_v0  ;;  %v2174_v10 = vpop.f32.mrb[14].mxu0  ;;  %681 = vadd.xlane.f32.xlu0 %v673_v4  ;;  %v667_v11 = vmul.f32 %v2898_v45, %v3120_v63  ;;  %v2451_v62 = vpack.c.bf16 %v1835_v60, %v1834_v57  ;;  %v1836_v0 = vld [vmem:[%s3572_s9 + $0xb0] sm:$0xff]  ;;  %v1837_v4 = vld [vmem:[%s3572_s9 + $0xb8] sm:$0xff] }
 0x383   :  { %v3127_v12 = vadd.f32 %v1829_v36, %v647_v5  ;;  %v632_v13 = vadd.f32 %v2174_v10, %v1819_v31  ;;  %v626_v14 = vpop.f32.mrb[15].mxu0  ;;  %v676_v16 = vadd.f32 %v668_v6, %v2930_v7  ;;  %v2455_v5 = vpack.c.bf16 %v1837_v4, %v1836_v0  ;;  %v1838_v6 = vld [vmem:[%s3572_s9 + $0xc0] sm:$0xff] }
 0x384   :  { %v3130_v17 = vadd.f32 %v1829_v36, %v646_v9  ;;  %v627_v20 = vadd.f32 %v1819_v31, %v626_v14  ;;  %v675_v32 = vadd.f32 %v667_v11, %v2923_v2  ;;  %v1839_v9 = vld [vmem:[%s3572_s9 + $0xc8] sm:$0xff]  ;;  %v1840_v11 = vld [vmem:[%s3572_s9 + $0xd0] sm:$0xff] }
 0x385   :  { %v649_v34 = vmul.f32 %v1828_v33, %v632_v13  ;;  %687 = vadd.xlane.f32.xlu1 %v676_v16  ;;  %v670_v35 = vmul.f32 %v2898_v45, %v3127_v12  ;;  %v2459_v10 = vpack.c.bf16 %v1839_v9, %v1838_v6  ;;  %v1841_v13 = vld [vmem:[%s3572_s9 + $0xd8] sm:$0xff]  ;;  %v1842_v16 = vld [vmem:[%s3572_s9 + $0xe0] sm:$0xff] }
 0x386   :  { %v648_v37 = vmul.f32 %v1828_v33, %v627_v20  ;;  %685 = vadd.xlane.f32.xlu0 %v675_v32  ;;  %v669_v38 = vmul.f32 %v2898_v45, %v3130_v17  ;;  %v2463_v14 = vpack.c.bf16 %v1841_v13, %v1840_v11  ;;  %v1843_v20 = vld [vmem:[%s3572_s9 + $0xe8] sm:$0xff] }
 0x387   :  { %v3137_v39 = vadd.f32 %v1829_v36, %v649_v34  ;;  %v678_v40 = vadd.f32 %v670_v35, %v2950_v21  ;;  %v2467_v32 = vpack.c.bf16 %v1843_v20, %v1842_v16  ;;  %v1844_v34 = vld [vmem:[%s3572_s9 + $0xf0] sm:$0xff]  ;;  %v1845_v35 = vld [vmem:[%s3572_s9 + $0xf8] sm:$0xff] }
 0x388   :  { %v3140_v43 = vadd.f32 %v1829_v36, %v648_v37  ;;  %v677_v31 = vadd.f32 %v669_v38, %v2939_v15  ;;  %v1830_v36 = vld [vmem:[%s3572_s9 + $0x80] sm:$0xff]  ;;  %v2471_v37 = vpack.c.bf16 %v1845_v35, %v1844_v34 }
 0x389   :  { %691 = vadd.xlane.f32.xlu1 %v678_v40  ;;  %v672_v44 = vmul.f32 %v2898_v45, %v3137_v39  ;;  %v2443_v51 = vpack.c.bf16 %v1831_v50, %v1830_v36 }
 0x38a   :  { %689 = vadd.xlane.f32.xlu0 %v677_v31  ;;  %v671_v33 = vmul.f32 %v2898_v45, %v3140_v43  ;;  %v1832_v45 = vld [vmem:[%s3572_s9 + $0x90] sm:$0xff] }
 0x38b   :  { %v680_v48 = vadd.f32 %v672_v44, %v2962_v27  ;;  %2444 = vmatprep.subr.bf16.mxu1 %v2443_v51  ;;  %v2447_v55 = vpack.c.bf16 %v1833_v52, %v1832_v45 }
 0x38c   :  { %v679_v49 = vadd.f32 %v671_v33, %v2955_v23  ;;  %2446 = vmatpush3.bf16.msra.mxu1 %v2443_v51 }
 0x38d   :  { %695 = vadd.xlane.f32.xlu1 %v680_v48  ;;  %2448 = vmatprep.subr.bf16.mxu1 %v2447_v55 }
 0x38e   :  { %693 = vadd.xlane.f32.xlu0 %v679_v49 }
 0x390   :  { %2450 = vmatpush3.bf16.msra.mxu1 %v2447_v55 }
 0x391   :  { %2452 = vmatprep.subr.bf16.mxu1 %v2451_v62 }
 0x394   :  { %2454 = vmatpush3.bf16.msra.mxu1 %v2451_v62 }
 0x395   :  { %2456 = vmatprep.subr.bf16.mxu1 %v2455_v5 }
 0x398   :  { %2458 = vmatpush3.bf16.msra.mxu1 %v2455_v5 }
 0x399   :  { %2460 = vmatprep.subr.bf16.mxu1 %v2459_v10 }
 0x39c   :  { %2462 = vmatpush3.bf16.msra.mxu1 %v2459_v10 }
 0x39d   :  { %2464 = vmatprep.subr.bf16.mxu1 %v2463_v14 }
 0x3a0   :  { %2466 = vmatpush3.bf16.msra.mxu1 %v2463_v14 }
 0x3a1   :  { %2468 = vmatprep.subr.bf16.mxu1 %v2467_v32 }
 0x3a4   :  { %2470 = vmatpush3.bf16.msra.mxu1 %v2467_v32 }
 0x3a5   :  { %2472 = vmatprep.subr.bf16.mxu1 %v2471_v37 }
 0x3a8   :  { %2474 = vmatpush3.bf16.msra.mxu1 %v2471_v37 }
 0x40e   :  { %v684_v38 = vpop.xlane.xlu1 %683 }
 0x40f   :  { %v698_v40 = vadd.f32 %v684_v38, %v3016_v59  ;;  %v682_v31 = vpop.xlane.xlu0 %681 }
 0x410   :  { %v697_v44 = vadd.f32 %v682_v31, %v3016_v59 }
 0x411   :  { %v706_v33 = vsub.f32 0.0, %v698_v40 }
 0x412   :  { %v705_v48 = vsub.f32 0.0, %v697_v44  ;;  %v688_v49 = vpop.xlane.xlu1 %687 }
 0x413   :  { %v715_v36 = vmul.f32 1.442695, %v706_v33  ;;  %v700_v50 = vadd.f32 %v688_v49, %v3016_v59  ;;  %v686_v51 = vpop.xlane.xlu0 %685 }
 0x414   :  { %v713_v45 = vmul.f32 1.442695, %v705_v48  ;;  %v699_v52 = vadd.f32 %v686_v51, %v3016_v59 }
 0x415   :  { %2603 = vpow2.f32 %v715_v36  ;;  %v708_v55 = vsub.f32 0.0, %v700_v50 }
 0x416   :  { %2605 = vpow2.f32 %v713_v45  ;;  %v707_v57 = vsub.f32 0.0, %v699_v52  ;;  %v692_v60 = vpop.xlane.xlu1 %691 }
 0x417   :  { %v719_v62 = vmul.f32 1.442695, %v708_v55  ;;  %v702_v0 = vadd.f32 %v692_v60, %v3016_v59  ;;  %v690_v4 = vpop.xlane.xlu0 %689 }
 0x418   :  { %v717_v5 = vmul.f32 1.442695, %v707_v57  ;;  %v701_v6 = vadd.f32 %v690_v4, %v3016_v59 }
 0x419   :  { %2607 = vpow2.f32 %v719_v62  ;;  %v710_v9 = vsub.f32 0.0, %v702_v0 }
 0x41a   :  { %2609 = vpow2.f32 %v717_v5  ;;  %v709_v10 = vsub.f32 0.0, %v701_v6  ;;  %v696_v11 = vpop.xlane.xlu1 %695 }
 0x41b   :  { %v723_v13 = vmul.f32 1.442695, %v710_v9  ;;  %v704_v14 = vadd.f32 %v696_v11, %v3016_v59  ;;  %v694_v16 = vpop.xlane.xlu0 %693 }
 0x41c   :  { %v721_v20 = vmul.f32 1.442695, %v709_v10  ;;  %v703_v32 = vadd.f32 %v694_v16, %v3016_v59 }
 0x41d   :  { %2611 = vpow2.f32 %v723_v13  ;;  %v712_v34 = vsub.f32 0.0, %v704_v14 }
 0x41e   :  { %2613 = vpow2.f32 %v721_v20  ;;  %v711_v35 = vsub.f32 0.0, %v703_v32 }
 0x41f   :  { %v2604_v37 = vpop.eup %2603  ;;  %v727_v38 = vmul.f32 1.442695, %v712_v34 }
 0x420   :  { %v2606_v40 = vpop.eup %2605  ;;  %v730_v31 = vadd.f32 1.0, %v2604_v37  ;;  %v725_v44 = vmul.f32 1.442695, %v711_v35 }
 0x421   :  { %v729_v33 = vadd.f32 1.0, %v2606_v40  ;;  %2615 = vpow2.f32 %v727_v38 }
 0x422   :  { %2617 = vrcp.f32 %v730_v31 }
 0x423   :  { %v2608_v48 = vpop.eup %2607  ;;  %2619 = vrcp.f32 %v729_v33 }
 0x424   :  { %v2610_v49 = vpop.eup %2609  ;;  %v732_v36 = vadd.f32 1.0, %v2608_v48  ;;  %2621 = vpow2.f32 %v725_v44 }
 0x425   :  { %v731_v50 = vadd.f32 1.0, %v2610_v49 }
 0x426   :  { %2623 = vrcp.f32 %v732_v36 }
 0x427   :  { %v2612_v51 = vpop.eup %2611  ;;  %2625 = vrcp.f32 %v731_v50 }
 0x428   :  { %v2614_v45 = vpop.eup %2613  ;;  %v734_v52 = vadd.f32 1.0, %v2612_v51 }
 0x429   :  { %v733_v55 = vadd.f32 1.0, %v2614_v45 }
 0x42a   :  { %2627 = vrcp.f32 %v734_v52 }
 0x42b   :  { %v2616_v57 = vpop.eup %2615  ;;  %2629 = vrcp.f32 %v733_v55 }
 0x42c   :  { %v2618_v60 = vpop.eup %2617  ;;  %v736_v62 = vadd.f32 1.0, %v2616_v57 }
 0x42d   :  { %v2620_v0 = vpop.eup %2619  ;;  %v754_v4 = vsub.f32 1.0, %v2618_v60  ;;  %v770_v11 = vmul.f32 %v2618_v60, %v2893_v42 }
 0x42e   :  { %v2622_v5 = vpop.eup %2621  ;;  %2631 = vrcp.f32 %v736_v62  ;;  %v753_v6 = vsub.f32 1.0, %v2620_v0  ;;  %v769_v16 = vmul.f32 %v2620_v0, %v2903_v47 }
 0x42f   :  { %v735_v9 = vadd.f32 1.0, %v2622_v5  ;;  %v762_v10 = vmul.f32 %v754_v4, %v3109_v41 }
 0x430   :  { %v2624_v13 = vpop.eup %2623  ;;  %v761_v14 = vmul.f32 %v753_v6, %v3111_v46 }
 0x431   :  { %v2626_v20 = vpop.eup %2625  ;;  %2633 = vrcp.f32 %v735_v9  ;;  %v778_v32 = vadd.f32 %v770_v11, %v762_v10  ;;  %v756_v34 = vsub.f32 1.0, %v2624_v13  ;;  %v772_v40 = vmul.f32 %v2624_v13, %v2910_v54 }
 0x432   :  { %v777_v35 = vadd.f32 %v769_v16, %v761_v14  ;;  %v755_v37 = vsub.f32 1.0, %v2626_v20  ;;  %v771_v33 = vmul.f32 %v2626_v20, %v2914_v58 }
 0x433   :  { %v764_v38 = vmul.f32 %v756_v34, %v3117_v56  ;;  %v786_v46 = vmax.f32 %v778_v32, 0.0 }
 0x434   :  { %v2628_v31 = vpop.eup %2627  ;;  %v785_v44 = vmax.f32 %v777_v35, 0.0  ;;  %v763_v41 = vmul.f32 %v755_v37, %v3120_v63 }
 0x435   :  { %v2630_v48 = vpop.eup %2629  ;;  %v780_v49 = vadd.f32 %v772_v40, %v764_v38  ;;  %v758_v36 = vsub.f32 1.0, %v2628_v31  ;;  %v774_v56 = vmul.f32 %v2628_v31, %v2925_v3 }
 0x436   :  { %2207 = vmatprep.mubr.f32.mxu1 %v785_v44  ;;  %v779_v50 = vadd.f32 %v771_v33, %v763_v41  ;;  %v757_v51 = vsub.f32 1.0, %v2630_v48  ;;  %v773_v63 = vmul.f32 %v2630_v48, %v2932_v8 }
 0x437   :  { %2208 = vmatmul.mubr.f32.vlgmr.msra.gmra.mrb[8].mxu1 %v786_v46  ;;  %v766_v45 = vmul.f32 %v758_v36, %v3127_v12  ;;  %v788_v60 = vmax.f32 %v780_v49, 0.0  ;;  %v1857_v49 = vld [vmem:[%s3576_s11 + $0x1] ss:$0 sm:$0xff] }
 0x438   :  { %v2632_v52 = vpop.eup %2631  ;;  %v787_v55 = vmax.f32 %v779_v50, 0.0  ;;  %v765_v57 = vmul.f32 %v757_v51, %v3130_v17  ;;  %v1859_v51 = vld [vmem:[%s3577_s12 + $0x1] ss:$0 sm:$0xff] }
 0x439   :  { %v782_v62 = vadd.f32 %v774_v56, %v766_v45  ;;  %v760_v0 = vsub.f32 1.0, %v2632_v52  ;;  %v776_v11 = vmul.f32 %v2632_v52, %v2944_v18 }
 0x43a   :  { %2210 = vmatprep.mubr.f32.mxu1 %v787_v55  ;;  %v781_v4 = vadd.f32 %v773_v63, %v765_v57 }
 0x43b   :  { %v2634_v5 = vpop.eup %2633  ;;  %2211 = vmatmul.mubr.f32.gmra.mrb[10].mxu1 %v788_v60  ;;  %v768_v6 = vmul.f32 %v760_v0, %v3137_v39  ;;  %v790_v12 = vmax.f32 %v782_v62, 0.0 }
 0x43c   :  { %v789_v9 = vmax.f32 %v781_v4, 0.0  ;;  %v759_v10 = vsub.f32 1.0, %v2634_v5  ;;  %v775_v17 = vmul.f32 %v2634_v5, %v2946_v19  ;;  %v3253_v5 = vld [vmem:[%s3570_s6] ss:$0 sm:$0xff] }
 0x43d   :  { %v784_v14 = vadd.f32 %v776_v11, %v768_v6 }
 0x43e   :  { %2213 = vmatprep.mubr.f32.mxu1 %v789_v9  ;;  %v767_v13 = vmul.f32 %v759_v10, %v3140_v43 }
 0x43f   :  { %2214 = vmatmul.mubr.f32.gmra.mrb[12].mxu1 %v790_v12  ;;  %v792_v32 = vmax.f32 %v784_v14, 0.0 }
 0x440   :  { %v783_v16 = vadd.f32 %v775_v17, %v767_v13 }
 0x442   :  { %v791_v20 = vmax.f32 %v783_v16, 0.0 }
 0x444   :  { %2216 = vmatprep.mubr.f32.mxu1 %v791_v20 }
 0x445   :  { %2217 = vmatmul.mubr.f32.gmra.mrb[14].mxu1 %v792_v32 }
 0x446   :  { %2307 = vmatprep.mubr.msk.f32.mxu1 %vm505_vm0, %v3045_v1  ;;  %v1847_v1 = vld [vmem:[%s3575_s10 + $0x1] ss:$0 sm:$0xff] }
 0x50a   :  { %v2209_v39 = vpop.f32.mrb[8].mxu1 }
 0x50b   :  { %v876_v34 = vpop.f32.mrb[9].mxu1 }
 0x50c   :  { %v2475_v35 = vpack.c.bf16 %v2209_v39, %v876_v34 }
 0x50e   :  { %v2212_v37 = vpop.f32.mrb[10].mxu1  ;;  %2476 = vmatprep.subr.bf16.mxu0 %v2475_v35 }
 0x50f   :  { %v886_v38 = vpop.f32.mrb[11].mxu1  ;;  %2478 = vmatpush3.bf16.msra.mxu0 %v2475_v35 }
 0x510   :  { %v2479_v43 = vpack.c.bf16 %v2212_v37, %v886_v38 }
 0x512   :  { %v2215_v40 = vpop.f32.mrb[12].mxu1  ;;  %2480 = vmatprep.subr.bf16.mxu0 %v2479_v43 }
 0x513   :  { %v896_v31 = vpop.f32.mrb[13].mxu1  ;;  %2482 = vmatpush3.bf16.msra.mxu0 %v2479_v43 }
 0x514   :  { %v2483_v44 = vpack.c.bf16 %v2215_v40, %v896_v31 }
 0x516   :  { %2484 = vmatprep.subr.bf16.mxu0 %v2483_v44 }
 0x517   :  { %2486 = vmatpush3.bf16.msra.mxu0 %v2483_v44 }
 0x518   :  { %v2218_v41 = vpop.f32.mrb[14].mxu1 }
 0x519   :  { %v906_v33 = vpop.f32.mrb[15].mxu1 }
 0x51a   :  { %v2487_v48 = vpack.c.bf16 %v2218_v41, %v906_v33 }
 0x51c   :  { %2488 = vmatprep.subr.bf16.mxu0 %v2487_v48 }
 0x51d   :  { %2490 = vmatpush3.bf16.msra.mxu0 %v2487_v48 }
 0x520   :  { %2236 = vmatmul.mubr.msk.f32.vlgmr.msra.gmra.mrb[16].mxu0 %vm505_vm0, %v3052_v22 }
 0x521   :  { %2238 = vmatprep.mubr.msk.f32.mxu0 %vm505_vm0, %v3057_v24 }
 0x524   :  { %2239 = vmatmul.mubr.msk.f32.gmra.mrb[18].mxu0 %vm505_vm0, %v3066_v25 }
 0x525   :  { %2241 = vmatprep.mubr.msk.f32.mxu0 %vm505_vm0, %v3071_v26 }
 0x528   :  { %2242 = vmatmul.mubr.msk.f32.gmra.mrb[20].mxu0 %vm505_vm0, %v3080_v28 }
 0x529   :  { %2244 = vmatprep.mubr.msk.f32.mxu0 %vm505_vm0, %v3085_v29 }
 0x52c   :  { %2245 = vmatmul.mubr.msk.f32.gmra.mrb[22].mxu0 %vm505_vm0, %v3094_v30 }
 0x5f3   :  { %v2237_v46 = vpop.f32.mrb[16].mxu0 }
 0x5f4   :  { %v995_v36 = vadd.f32 %v2237_v46, %v1847_v1  ;;  %v989_v50 = vpop.f32.mrb[17].mxu0 }
 0x5f5   :  { %v990_v45 = vadd.f32 %v1847_v1, %v989_v50 }
 0x5f6   :  { %v1037_v56 = vmul.f32 %v1857_v49, %v995_v36 }
 0x5f7   :  { %v1036_v52 = vmul.f32 %v1857_v49, %v990_v45  ;;  %v2240_v55 = vpop.f32.mrb[18].mxu0 }
 0x5f8   :  { %v3246_v57 = vadd.f32 %v1859_v51, %v1037_v56  ;;  %v1005_v63 = vadd.f32 %v2240_v55, %v1847_v1  ;;  %v999_v60 = vpop.f32.mrb[19].mxu0 }
 0x5f9   :  { %v3248_v62 = vadd.f32 %v1859_v51, %v1036_v52  ;;  %v1000_v0 = vadd.f32 %v1847_v1, %v999_v60 }
 0x5fa   :  { %v1039_v4 = vmul.f32 %v1857_v49, %v1005_v63  ;;  %v1061_v6 = vmul.f32 %v3253_v5, %v3246_v57 }
 0x5fb   :  { %v1038_v9 = vmul.f32 %v1857_v49, %v1000_v0  ;;  %v2243_v10 = vpop.f32.mrb[20].mxu0  ;;  %v1060_v12 = vmul.f32 %v3253_v5, %v3248_v62 }
 0x5fc   :  { %v3259_v11 = vadd.f32 %v1859_v51, %v1039_v4  ;;  %v1015_v13 = vadd.f32 %v2243_v10, %v1847_v1  ;;  %v1009_v17 = vpop.f32.mrb[21].mxu0  ;;  %v1069_v14 = vadd.f32 %v1061_v6, %v2918_v61  ;;  %v1861_v4 = vld [vmem:[%s3572_s9 + $0x108] sm:$0xff]  ;;  %v1863_v10 = vld [vmem:[%s3572_s9 + $0x118] sm:$0xff] }
 0x5fd   :  { %v3262_v16 = vadd.f32 %v1859_v51, %v1038_v9  ;;  %v1010_v20 = vadd.f32 %v1847_v1, %v1009_v17  ;;  %v1068_v32 = vadd.f32 %v1060_v12, %v2908_v53  ;;  %v1862_v9 = vld [vmem:[%s3572_s9 + $0x110] sm:$0xff]  ;;  %v1865_v17 = vld [vmem:[%s3572_s9 + $0x128] sm:$0xff] }
 0x5fe   :  { %v1041_v39 = vmul.f32 %v1857_v49, %v1015_v13  ;;  %1078 = vadd.xlane.f32.xlu1 %v1069_v14  ;;  %v1063_v34 = vmul.f32 %v3253_v5, %v3259_v11  ;;  %v2495_v12 = vpack.c.bf16 %v1863_v10, %v1862_v9  ;;  %v1864_v13 = vld [vmem:[%s3572_s9 + $0x120] sm:$0xff] }
 0x5ff   :  { %v1040_v35 = vmul.f32 %v1857_v49, %v1010_v20  ;;  %v2246_v37 = vpop.f32.mrb[22].mxu0  ;;  %1076 = vadd.xlane.f32.xlu0 %v1068_v32  ;;  %v1062_v38 = vmul.f32 %v3253_v5, %v3262_v16  ;;  %v2499_v14 = vpack.c.bf16 %v1865_v17, %v1864_v13  ;;  %v1866_v20 = vld [vmem:[%s3572_s9 + $0x130] sm:$0xff]  ;;  %v1867_v32 = vld [vmem:[%s3572_s9 + $0x138] sm:$0xff] }
 0x600   :  { %v3269_v43 = vadd.f32 %v1859_v51, %v1041_v39  ;;  %v1025_v40 = vadd.f32 %v2246_v37, %v1847_v1  ;;  %v1019_v31 = vpop.f32.mrb[23].mxu0  ;;  %v1071_v44 = vadd.f32 %v1063_v34, %v2930_v7  ;;  %v2503_v39 = vpack.c.bf16 %v1867_v32, %v1866_v20  ;;  %v1868_v34 = vld [vmem:[%s3572_s9 + $0x140] sm:$0xff] }
 0x601   :  { %v3272_v41 = vadd.f32 %v1859_v51, %v1040_v35  ;;  %v1020_v33 = vadd.f32 %v1847_v1, %v1019_v31  ;;  %v1070_v48 = vadd.f32 %v1062_v38, %v2923_v2  ;;  %v1869_v35 = vld [vmem:[%s3572_s9 + $0x148] sm:$0xff]  ;;  %v1870_v38 = vld [vmem:[%s3572_s9 + $0x150] sm:$0xff] }
 0x602   :  { %v1043_v46 = vmul.f32 %v1857_v49, %v1025_v40  ;;  %1082 = vadd.xlane.f32.xlu1 %v1071_v44  ;;  %v1065_v36 = vmul.f32 %v3253_v5, %v3269_v43  ;;  %v2507_v37 = vpack.c.bf16 %v1869_v35, %v1868_v34  ;;  %v1871_v40 = vld [vmem:[%s3572_s9 + $0x158] sm:$0xff]  ;;  %v1872_v44 = vld [vmem:[%s3572_s9 + $0x160] sm:$0xff] }
 0x603   :  { %v1042_v50 = vmul.f32 %v1857_v49, %v1020_v33  ;;  %1080 = vadd.xlane.f32.xlu0 %v1070_v48  ;;  %v1064_v45 = vmul.f32 %v3253_v5, %v3272_v41  ;;  %v2511_v31 = vpack.c.bf16 %v1871_v40, %v1870_v38  ;;  %v1873_v33 = vld [vmem:[%s3572_s9 + $0x168] sm:$0xff] }
 0x604   :  { %v3279_v56 = vadd.f32 %v1859_v51, %v1043_v46  ;;  %v1073_v52 = vadd.f32 %v1065_v36, %v2950_v21  ;;  %v2515_v48 = vpack.c.bf16 %v1873_v33, %v1872_v44  ;;  %v1874_v46 = vld [vmem:[%s3572_s9 + $0x170] sm:$0xff]  ;;  %v1875_v36 = vld [vmem:[%s3572_s9 + $0x178] sm:$0xff] }
 0x605   :  { %v3282_v55 = vadd.f32 %v1859_v51, %v1042_v50  ;;  %v1072_v1 = vadd.f32 %v1064_v45, %v2939_v15  ;;  %v1860_v51 = vld [vmem:[%s3572_s9 + $0x100] sm:$0xff]  ;;  %v2519_v50 = vpack.c.bf16 %v1875_v36, %v1874_v46 }
 0x606   :  { %1086 = vadd.xlane.f32.xlu1 %v1073_v52  ;;  %v1067_v63 = vmul.f32 %v3253_v5, %v3279_v56  ;;  %v2491_v6 = vpack.c.bf16 %v1861_v4, %v1860_v51 }
 0x607   :  { %1084 = vadd.xlane.f32.xlu0 %v1072_v1  ;;  %v1066_v49 = vmul.f32 %v3253_v5, %v3282_v55 }
 0x608   :  { %v1075_v60 = vadd.f32 %v1067_v63, %v2962_v27  ;;  %2492 = vmatprep.subr.bf16.mxu0 %v2491_v6 }
 0x609   :  { %v1074_v0 = vadd.f32 %v1066_v49, %v2955_v23  ;;  %2494 = vmatpush3.bf16.msra.mxu0 %v2491_v6 }
 0x60a   :  { %1090 = vadd.xlane.f32.xlu1 %v1075_v60  ;;  %2496 = vmatprep.subr.bf16.mxu0 %v2495_v12 }
 0x60b   :  { %1088 = vadd.xlane.f32.xlu0 %v1074_v0 }
 0x60d   :  { %2498 = vmatpush3.bf16.msra.mxu0 %v2495_v12 }
 0x60e   :  { %2500 = vmatprep.subr.bf16.mxu0 %v2499_v14 }
 0x611   :  { %2502 = vmatpush3.bf16.msra.mxu0 %v2499_v14 }
 0x612   :  { %2504 = vmatprep.subr.bf16.mxu0 %v2503_v39 }
 0x615   :  { %2506 = vmatpush3.bf16.msra.mxu0 %v2503_v39 }
 0x616   :  { %2508 = vmatprep.subr.bf16.mxu0 %v2507_v37 }
 0x619   :  { %2510 = vmatpush3.bf16.msra.mxu0 %v2507_v37 }
 0x61a   :  { %2512 = vmatprep.subr.bf16.mxu0 %v2511_v31 }
 0x61d   :  { %2514 = vmatpush3.bf16.msra.mxu0 %v2511_v31 }
 0x61e   :  { %2516 = vmatprep.subr.bf16.mxu0 %v2515_v48 }
 0x621   :  { %2518 = vmatpush3.bf16.msra.mxu0 %v2515_v48 }
 0x622   :  { %2520 = vmatprep.subr.bf16.mxu0 %v2519_v50 }
 0x625   :  { %2522 = vmatpush3.bf16.msra.mxu0 %v2519_v50 }
 0x68b   :  { %v1079_v45 = vpop.xlane.xlu1 %1078 }
 0x68c   :  { %v1093_v52 = vadd.f32 %v1079_v45, %v3016_v59  ;;  %v1077_v1 = vpop.xlane.xlu0 %1076 }
 0x68d   :  { %v1092_v63 = vadd.f32 %v1077_v1, %v3016_v59 }
 0x68e   :  { %v1101_v49 = vsub.f32 0.0, %v1093_v52 }
 0x68f   :  { %v1100_v60 = vsub.f32 0.0, %v1092_v63  ;;  %v1083_v0 = vpop.xlane.xlu1 %1082 }
 0x690   :  { %v1110_v51 = vmul.f32 1.442695, %v1101_v49  ;;  %v1095_v4 = vadd.f32 %v1083_v0, %v3016_v59  ;;  %v1081_v6 = vpop.xlane.xlu0 %1080 }
 0x691   :  { %v1108_v9 = vmul.f32 1.442695, %v1100_v60  ;;  %v1094_v10 = vadd.f32 %v1081_v6, %v3016_v59 }
 0x692   :  { %2635 = vpow2.f32 %v1110_v51  ;;  %v1103_v12 = vsub.f32 0.0, %v1095_v4 }
 0x693   :  { %2637 = vpow2.f32 %v1108_v9  ;;  %v1102_v13 = vsub.f32 0.0, %v1094_v10  ;;  %v1087_v17 = vpop.xlane.xlu1 %1086 }
 0x694   :  { %v1114_v14 = vmul.f32 1.442695, %v1103_v12  ;;  %v1097_v20 = vadd.f32 %v1087_v17, %v3016_v59  ;;  %v1085_v32 = vpop.xlane.xlu0 %1084 }
 0x695   :  { %v1112_v39 = vmul.f32 1.442695, %v1102_v13  ;;  %v1096_v34 = vadd.f32 %v1085_v32, %v3016_v59 }
 0x696   :  { %2639 = vpow2.f32 %v1114_v14  ;;  %v1105_v35 = vsub.f32 0.0, %v1097_v20 }
 0x697   :  { %2641 = vpow2.f32 %v1112_v39  ;;  %v1104_v37 = vsub.f32 0.0, %v1096_v34  ;;  %v1091_v38 = vpop.xlane.xlu1 %1090 }
 0x698   :  { %v1118_v40 = vmul.f32 1.442695, %v1105_v35  ;;  %v1099_v31 = vadd.f32 %v1091_v38, %v3016_v59  ;;  %v1089_v44 = vpop.xlane.xlu0 %1088 }
 0x699   :  { %v1116_v33 = vmul.f32 1.442695, %v1104_v37  ;;  %v1098_v48 = vadd.f32 %v1089_v44, %v3016_v59 }
 0x69a   :  { %2643 = vpow2.f32 %v1118_v40  ;;  %v1107_v46 = vsub.f32 0.0, %v1099_v31 }
 0x69b   :  { %2645 = vpow2.f32 %v1116_v33  ;;  %v1106_v36 = vsub.f32 0.0, %v1098_v48 }
 0x69c   :  { %v2636_v50 = vpop.eup %2635  ;;  %v1122_v45 = vmul.f32 1.442695, %v1107_v46 }
 0x69d   :  { %v2638_v52 = vpop.eup %2637  ;;  %v1125_v1 = vadd.f32 1.0, %v2636_v50  ;;  %v1120_v63 = vmul.f32 1.442695, %v1106_v36 }
 0x69e   :  { %v1124_v49 = vadd.f32 1.0, %v2638_v52  ;;  %2647 = vpow2.f32 %v1122_v45 }
 0x69f   :  { %2649 = vrcp.f32 %v1125_v1 }
 0x6a0   :  { %v2640_v60 = vpop.eup %2639  ;;  %2651 = vrcp.f32 %v1124_v49 }
 0x6a1   :  { %v2642_v0 = vpop.eup %2641  ;;  %v1127_v51 = vadd.f32 1.0, %v2640_v60  ;;  %2653 = vpow2.f32 %v1120_v63 }
 0x6a2   :  { %v1126_v4 = vadd.f32 1.0, %v2642_v0 }
 0x6a3   :  { %2655 = vrcp.f32 %v1127_v51 }
 0x6a4   :  { %v2644_v6 = vpop.eup %2643  ;;  %2657 = vrcp.f32 %v1126_v4 }
 0x6a5   :  { %v2646_v9 = vpop.eup %2645  ;;  %v1129_v10 = vadd.f32 1.0, %v2644_v6 }
 0x6a6   :  { %v1128_v12 = vadd.f32 1.0, %v2646_v9 }
 0x6a7   :  { %2659 = vrcp.f32 %v1129_v10 }
 0x6a8   :  { %v2648_v13 = vpop.eup %2647  ;;  %2661 = vrcp.f32 %v1128_v12 }
 0x6a9   :  { %v2650_v17 = vpop.eup %2649  ;;  %v1131_v14 = vadd.f32 1.0, %v2648_v13 }
 0x6aa   :  { %v2652_v20 = vpop.eup %2651  ;;  %v1149_v32 = vsub.f32 1.0, %v2650_v17  ;;  %v1165_v38 = vmul.f32 %v2650_v17, %v2893_v42 }
 0x6ab   :  { %v2654_v39 = vpop.eup %2653  ;;  %2663 = vrcp.f32 %v1131_v14  ;;  %v1148_v34 = vsub.f32 1.0, %v2652_v20  ;;  %v1164_v44 = vmul.f32 %v2652_v20, %v2903_v47 }
 0x6ac   :  { %v1130_v35 = vadd.f32 1.0, %v2654_v39  ;;  %v1157_v37 = vmul.f32 %v1149_v32, %v3246_v57 }
 0x6ad   :  { %v2656_v40 = vpop.eup %2655  ;;  %v1156_v31 = vmul.f32 %v1148_v34, %v3248_v62 }
 0x6ae   :  { %v2658_v33 = vpop.eup %2657  ;;  %2665 = vrcp.f32 %v1130_v35  ;;  %v1173_v48 = vadd.f32 %v1165_v38, %v1157_v37  ;;  %v1151_v46 = vsub.f32 1.0, %v2656_v40  ;;  %v1167_v52 = vmul.f32 %v2656_v40, %v2910_v54 }
 0x6af   :  { %v1172_v36 = vadd.f32 %v1164_v44, %v1156_v31  ;;  %v1150_v50 = vsub.f32 1.0, %v2658_v33  ;;  %v1166_v49 = vmul.f32 %v2658_v33, %v2914_v58 }
 0x6b0   :  { %v1159_v45 = vmul.f32 %v1151_v46, %v3259_v11  ;;  %v1181_v62 = vmax.f32 %v1173_v48, 0.0 }
 0x6b1   :  { %v2660_v1 = vpop.eup %2659  ;;  %v1180_v63 = vmax.f32 %v1172_v36, 0.0  ;;  %v1158_v57 = vmul.f32 %v1150_v50, %v3262_v16 }
 0x6b2   :  { %v2662_v60 = vpop.eup %2661  ;;  %v1175_v0 = vadd.f32 %v1167_v52, %v1159_v45  ;;  %v1153_v51 = vsub.f32 1.0, %v2660_v1  ;;  %v1169_v11 = vmul.f32 %v2660_v1, %v2925_v3 }
 0x6b3   :  { %2279 = vmatprep.mubr.f32.mxu0 %v1180_v63  ;;  %v1174_v4 = vadd.f32 %v1166_v49, %v1158_v57  ;;  %v1152_v6 = vsub.f32 1.0, %v2662_v60  ;;  %v1168_v16 = vmul.f32 %v2662_v60, %v2932_v8 }
 0x6b4   :  { %2280 = vmatmul.mubr.f32.vlgmr.msra.gmra.mrb[24].mxu0 %v1181_v62  ;;  %v1161_v9 = vmul.f32 %v1153_v51, %v3269_v43  ;;  %v1183_v17 = vmax.f32 %v1175_v0, 0.0 }
 0x6b5   :  { %v2664_v10 = vpop.eup %2663  ;;  %v1182_v12 = vmax.f32 %v1174_v4, 0.0  ;;  %v1160_v13 = vmul.f32 %v1152_v6, %v3272_v41 }
 0x6b6   :  { %v1177_v14 = vadd.f32 %v1169_v11, %v1161_v9  ;;  %v1155_v20 = vsub.f32 1.0, %v2664_v10  ;;  %v1171_v38 = vmul.f32 %v2664_v10, %v2944_v18 }
 0x6b7   :  { %2282 = vmatprep.mubr.f32.mxu0 %v1182_v12  ;;  %v1176_v32 = vadd.f32 %v1168_v16, %v1160_v13 }
 0x6b8   :  { %v2666_v39 = vpop.eup %2665  ;;  %2283 = vmatmul.mubr.f32.gmra.mrb[26].mxu0 %v1183_v17  ;;  %v1163_v34 = vmul.f32 %v1155_v20, %v3279_v56  ;;  %v1185_v43 = vmax.f32 %v1177_v14, 0.0 }
 0x6b9   :  { %v1184_v35 = vmax.f32 %v1176_v32, 0.0  ;;  %v1154_v37 = vsub.f32 1.0, %v2666_v39  ;;  %v1170_v41 = vmul.f32 %v2666_v39, %v2946_v19 }
 0x6ba   :  { %v1179_v31 = vadd.f32 %v1171_v38, %v1163_v34 }
 0x6bb   :  { %2285 = vmatprep.mubr.f32.mxu0 %v1184_v35  ;;  %v1162_v40 = vmul.f32 %v1154_v37, %v3282_v55 }
 0x6bc   :  { %2286 = vmatmul.mubr.f32.gmra.mrb[28].mxu0 %v1185_v43  ;;  %v1187_v48 = vmax.f32 %v1179_v31, 0.0 }
 0x6bd   :  { %v1178_v44 = vadd.f32 %v1170_v41, %v1162_v40 }
 0x6bf   :  { %v1186_v33 = vmax.f32 %v1178_v44, 0.0 }
 0x6c1   :  { %2288 = vmatprep.mubr.f32.mxu0 %v1186_v33 }
 0x6c2   :  { %2289 = vmatmul.mubr.f32.gmra.mrb[30].mxu0 %v1187_v48 }
 0x787   :  { %v2281_v46 = vpop.f32.mrb[24].mxu0 }
 0x788   :  { %v1271_v36 = vpop.f32.mrb[25].mxu0 }
 0x789   :  { %v2523_v56 = vpack.c.bf16 %v2281_v46, %v1271_v36 }
 0x78b   :  { %v2284_v50 = vpop.f32.mrb[26].mxu0  ;;  %2524 = vmatprep.subr.bf16.mxu1 %v2523_v56 }
 0x78c   :  { %v1281_v45 = vpop.f32.mrb[27].mxu0  ;;  %2526 = vmatpush3.bf16.msra.mxu1 %v2523_v56 }
 0x78d   :  { %v2527_v52 = vpack.c.bf16 %v2284_v50, %v1281_v45 }
 0x78f   :  { %v2287_v1 = vpop.f32.mrb[28].mxu0  ;;  %2528 = vmatprep.subr.bf16.mxu1 %v2527_v52 }
 0x790   :  { %v1291_v55 = vpop.f32.mrb[29].mxu0  ;;  %2530 = vmatpush3.bf16.msra.mxu1 %v2527_v52 }
 0x791   :  { %v2531_v63 = vpack.c.bf16 %v2287_v1, %v1291_v55 }
 0x793   :  { %2532 = vmatprep.subr.bf16.mxu1 %v2531_v63 }
 0x794   :  { %2534 = vmatpush3.bf16.msra.mxu1 %v2531_v63 }
 0x795   :  { %v2290_v57 = vpop.f32.mrb[30].mxu0 }
 0x796   :  { %v1301_v49 = vpop.f32.mrb[31].mxu0 }
 0x797   :  { %v2535_v60 = vpack.c.bf16 %v2290_v57, %v1301_v49 }
 0x799   :  { %2536 = vmatprep.subr.bf16.mxu1 %v2535_v60 }
 0x79a   :  { %2538 = vmatpush3.bf16.msra.mxu1 %v2535_v60 }
 0x79d   :  { %2308 = vmatmul.mubr.msk.f32.vlgmr.msra.gmra.mrb[16].mxu1 %vm505_vm0, %v3052_v22  ;;  %v1877_v22 = vld [vmem:[%s3575_s10 + $0x2] ss:$0 sm:$0xff] }
 0x79e   :  { %2310 = vmatprep.mubr.msk.f32.mxu1 %vm505_vm0, %v3057_v24 }
 0x7a1   :  { %2311 = vmatmul.mubr.msk.f32.gmra.mrb[18].mxu1 %vm505_vm0, %v3066_v25  ;;  %v1887_v25 = vld [vmem:[%s3576_s11 + $0x2] ss:$0 sm:$0xff] }
 0x7a2   :  { %2313 = vmatprep.mubr.msk.f32.mxu1 %vm505_vm0, %v3071_v26 }
 0x7a5   :  { %2314 = vmatmul.mubr.msk.f32.gmra.mrb[20].mxu1 %vm505_vm0, %v3080_v28  ;;  %v1889_v28 = vld [vmem:[%s3577_s12 + $0x2] ss:$0 sm:$0xff] }
 0x7a6   :  { %2316 = vmatprep.mubr.msk.f32.mxu1 %vm505_vm0, %v3085_v29 }
 0x7a9   :  { %2317 = vmatmul.mubr.msk.f32.gmra.mrb[22].mxu1 %vm505_vm0, %v3094_v30 }
 0x870   :  { %v2309_v24 = vpop.f32.mrb[16].mxu1 }
 0x871   :  { %v1390_v62 = vadd.f32 %v2309_v24, %v1877_v22  ;;  %v1384_v26 = vpop.f32.mrb[17].mxu1 }
 0x872   :  { %v1385_v0 = vadd.f32 %v1877_v22, %v1384_v26 }
 0x873   :  { %v1432_v29 = vmul.f32 %v1887_v25, %v1390_v62  ;;  %v1588_v62 = vld [vmem:[%s3578_s13 + $0x28] sm:$0xff] }
 0x874   :  { %v1431_v51 = vmul.f32 %v1887_v25, %v1385_v0  ;;  %v2312_v4 = vpop.f32.mrb[18].mxu1  ;;  %v1590_v0 = vld [vmem:[%s3578_s13 + $0x38] sm:$0xff] }
 0x875   :  { %v3386_v30 = vadd.f32 %v1889_v28, %v1432_v29  ;;  %v1400_v6 = vadd.f32 %v2312_v4, %v1877_v22  ;;  %v1394_v9 = vpop.f32.mrb[19].mxu1  ;;  %v1592_v4 = vld [vmem:[%s3578_s13 + $0x48] sm:$0xff] }
 0x876   :  { %v3388_v11 = vadd.f32 %v1889_v28, %v1431_v51  ;;  %v1395_v10 = vadd.f32 %v1877_v22, %v1394_v9  ;;  %v1591_v51 = vld [vmem:[%s3578_s13 + $0x40] sm:$0xff]  ;;  %v1593_v9 = vld [vmem:[%s3578_s13 + $0x50] sm:$0xff] }
 0x877   :  { %v1434_v12 = vmul.f32 %v1887_v25, %v1400_v6  ;;  %v1456_v13 = vmul.f32 %v3253_v5, %v3386_v30  ;;  %v2555_v6 = vpack.c.bf16 %v1592_v4, %v1591_v51 }
 0x878   :  { %v1433_v16 = vmul.f32 %v1887_v25, %v1395_v10  ;;  %v2315_v17 = vpop.f32.mrb[20].mxu1  ;;  %v1455_v14 = vmul.f32 %v3253_v5, %v3388_v11  ;;  %v1594_v10 = vld [vmem:[%s3578_s13 + $0x58] sm:$0xff] }
 0x879   :  { %v3394_v20 = vadd.f32 %v1889_v28, %v1434_v12  ;;  %v1410_v32 = vadd.f32 %v2315_v17, %v1877_v22  ;;  %v1404_v39 = vpop.f32.mrb[21].mxu1  ;;  %v1464_v34 = vadd.f32 %v1456_v13, %v2918_v61  ;;  %v2559_v12 = vpack.c.bf16 %v1594_v10, %v1593_v9  ;;  %v1595_v13 = vld [vmem:[%s3578_s13 + $0x60] sm:$0xff] }
 0x87a   :  { %v3397_v35 = vadd.f32 %v1889_v28, %v1433_v16  ;;  %v1405_v37 = vadd.f32 %v1877_v22, %v1404_v39  ;;  %v1463_v43 = vadd.f32 %v1455_v14, %v2908_v53  ;;  %v1596_v16 = vld [vmem:[%s3578_s13 + $0x68] sm:$0xff]  ;;  %v1597_v14 = vld [vmem:[%s3578_s13 + $0x70] sm:$0xff] }
 0x87b   :  { %v1436_v38 = vmul.f32 %v1887_v25, %v1410_v32  ;;  %1473 = vadd.xlane.f32.xlu1 %v1464_v34  ;;  %v1458_v40 = vmul.f32 %v3253_v5, %v3394_v20  ;;  %v2563_v17 = vpack.c.bf16 %v1596_v16, %v1595_v13  ;;  %v1598_v32 = vld [vmem:[%s3578_s13 + $0x78] sm:$0xff] }
 0x87c   :  { %v1435_v41 = vmul.f32 %v1887_v25, %v1405_v37  ;;  %v2318_v31 = vpop.f32.mrb[22].mxu1  ;;  %1471 = vadd.xlane.f32.xlu0 %v1463_v43  ;;  %v1457_v44 = vmul.f32 %v3253_v5, %v3397_v35  ;;  %v2567_v39 = vpack.c.bf16 %v1598_v32, %v1597_v14 }
 0x87d   :  { %v3404_v33 = vadd.f32 %v1889_v28, %v1436_v38  ;;  %v1420_v48 = vadd.f32 %v2318_v31, %v1877_v22  ;;  %v1414_v61 = vpop.f32.mrb[23].mxu1  ;;  %v1466_v46 = vadd.f32 %v1458_v40, %v2930_v7 }
 0x87e   :  { %v3407_v36 = vadd.f32 %v1889_v28, %v1435_v41  ;;  %v1415_v53 = vadd.f32 %v1877_v22, %v1414_v61  ;;  %v1465_v56 = vadd.f32 %v1457_v44, %v2923_v2 }
 0x87f   :  { %v1438_v50 = vmul.f32 %v1887_v25, %v1420_v48  ;;  %1477 = vadd.xlane.f32.xlu1 %v1466_v46  ;;  %v1460_v45 = vmul.f32 %v3253_v5, %v3404_v33 }
 0x880   :  { %v1437_v52 = vmul.f32 %v1887_v25, %v1415_v53  ;;  %1475 = vadd.xlane.f32.xlu0 %v1465_v56  ;;  %v1459_v1 = vmul.f32 %v3253_v5, %v3407_v36  ;;  %v1587_v25 = vld [vmem:[%s3578_s13 + $0x20] sm:$0xff] }
 0x881   :  { %v3414_v55 = vadd.f32 %v1889_v28, %v1438_v50  ;;  %v1468_v63 = vadd.f32 %v1460_v45, %v2950_v21  ;;  %v1583_v21 = vld [vmem:[%s3578_s13] sm:$0xff]  ;;  %v2547_v26 = vpack.c.bf16 %v1588_v62, %v1587_v25 }
 0x882   :  { %v3417_v7 = vadd.f32 %v1889_v28, %v1437_v52  ;;  %v1467_v57 = vadd.f32 %v1459_v1, %v2939_v15  ;;  %v1584_v15 = vld [vmem:[%s3578_s13 + $0x8] sm:$0xff]  ;;  %v1589_v28 = vld [vmem:[%s3578_s13 + $0x30] sm:$0xff] }
 0x883   :  { %1481 = vadd.xlane.f32.xlu1 %v1468_v63  ;;  %v1462_v2 = vmul.f32 %v3253_v5, %v3414_v55  ;;  %v2539_v24 = vpack.c.bf16 %v1584_v15, %v1583_v21  ;;  %v2551_v29 = vpack.c.bf16 %v1590_v0, %v1589_v28 }
 0x884   :  { %1479 = vadd.xlane.f32.xlu0 %v1467_v57  ;;  %v1461_v49 = vmul.f32 %v3253_v5, %v3417_v7  ;;  %v1585_v5 = vld [vmem:[%s3578_s13 + $0x10] sm:$0xff] }
 0x885   :  { %v1470_v60 = vadd.f32 %v1462_v2, %v2962_v27  ;;  %2540 = vmatprep.subr.bf16.mxu1 %v2539_v24 }
 0x886   :  { %v1469_v22 = vadd.f32 %v1461_v49, %v2955_v23  ;;  %2542 = vmatpush3.bf16.msra.mxu1 %v2539_v24  ;;  %v1586_v23 = vld [vmem:[%s3578_s13 + $0x18] sm:$0xff] }
 0x887   :  { %1485 = vadd.xlane.f32.xlu1 %v1470_v60  ;;  %v2543_v27 = vpack.c.bf16 %v1586_v23, %v1585_v5 }
 0x888   :  { %1483 = vadd.xlane.f32.xlu0 %v1469_v22 }
 0x889   :  { %2544 = vmatprep.subr.bf16.mxu1 %v2543_v27 }
 0x88a   :  { %2546 = vmatpush3.bf16.msra.mxu1 %v2543_v27 }
 0x88b   :  { %2548 = vmatprep.subr.bf16.mxu1 %v2547_v26 }
 0x88e   :  { %2550 = vmatpush3.bf16.msra.mxu1 %v2547_v26 }
 0x88f   :  { %2552 = vmatprep.subr.bf16.mxu1 %v2551_v29 }
 0x892   :  { %2554 = vmatpush3.bf16.msra.mxu1 %v2551_v29 }
 0x893   :  { %2556 = vmatprep.subr.bf16.mxu1 %v2555_v6 }
 0x896   :  { %2558 = vmatpush3.bf16.msra.mxu1 %v2555_v6 }
 0x897   :  { %2560 = vmatprep.subr.bf16.mxu1 %v2559_v12 }
 0x89a   :  { %2562 = vmatpush3.bf16.msra.mxu1 %v2559_v12 }
 0x89b   :  { %2564 = vmatprep.subr.bf16.mxu1 %v2563_v17 }
 0x89e   :  { %2566 = vmatpush3.bf16.msra.mxu1 %v2563_v17 }
 0x89f   :  { %2568 = vmatprep.subr.bf16.mxu1 %v2567_v39 }
 0x8a2   :  { %2570 = vmatpush3.bf16.msra.mxu1 %v2567_v39 }
 0x908   :  { %v1474_v34 = vpop.xlane.xlu1 %1473 }
 0x909   :  { %v1488_v37 = vadd.f32 %v1474_v34, %v3016_v59  ;;  %v1472_v43 = vpop.xlane.xlu0 %1471 }
 0x90a   :  { %v1487_v38 = vadd.f32 %v1472_v43, %v3016_v59 }
 0x90b   :  { %v1496_v40 = vsub.f32 0.0, %v1488_v37 }
 0x90c   :  { %v1495_v41 = vsub.f32 0.0, %v1487_v38  ;;  %v1478_v31 = vpop.xlane.xlu1 %1477 }
 0x90d   :  { %v1505_v44 = vmul.f32 1.442695, %v1496_v40  ;;  %v1490_v48 = vadd.f32 %v1478_v31, %v3016_v59  ;;  %v1476_v61 = vpop.xlane.xlu0 %1475 }
 0x90e   :  { %v1503_v46 = vmul.f32 1.442695, %v1495_v41  ;;  %v1489_v53 = vadd.f32 %v1476_v61, %v3016_v59 }
 0x90f   :  { %2667 = vpow2.f32 %v1505_v44  ;;  %v1498_v56 = vsub.f32 0.0, %v1490_v48 }
 0x910   :  { %2669 = vpow2.f32 %v1503_v46  ;;  %v1497_v50 = vsub.f32 0.0, %v1489_v53  ;;  %v1482_v45 = vpop.xlane.xlu1 %1481 }
 0x911   :  { %v1509_v52 = vmul.f32 1.442695, %v1498_v56  ;;  %v1492_v1 = vadd.f32 %v1482_v45, %v3016_v59  ;;  %v1480_v63 = vpop.xlane.xlu0 %1479 }
 0x912   :  { %v1507_v57 = vmul.f32 1.442695, %v1497_v50  ;;  %v1491_v2 = vadd.f32 %v1480_v63, %v3016_v59 }
 0x913   :  { %2671 = vpow2.f32 %v1509_v52  ;;  %v1500_v49 = vsub.f32 0.0, %v1492_v1 }
 0x914   :  { %2673 = vpow2.f32 %v1507_v57  ;;  %v1499_v60 = vsub.f32 0.0, %v1491_v2  ;;  %v1486_v22 = vpop.xlane.xlu1 %1485 }
 0x915   :  { %v1513_v21 = vmul.f32 1.442695, %v1500_v49  ;;  %v1494_v15 = vadd.f32 %v1486_v22, %v3016_v59  ;;  %v1484_v24 = vpop.xlane.xlu0 %1483 }
 0x916   :  { %v1511_v5 = vmul.f32 1.442695, %v1499_v60  ;;  %v1493_v23 = vadd.f32 %v1484_v24, %v3016_v59 }
 0x917   :  { %2675 = vpow2.f32 %v1513_v21  ;;  %v1502_v27 = vsub.f32 0.0, %v1494_v15 }
 0x918   :  { %2677 = vpow2.f32 %v1511_v5  ;;  %v1501_v25 = vsub.f32 0.0, %v1493_v23 }
 0x919   :  { %v2668_v62 = vpop.eup %2667  ;;  %v1517_v26 = vmul.f32 1.442695, %v1502_v27 }
 0x91a   :  { %v2670_v28 = vpop.eup %2669  ;;  %v1520_v0 = vadd.f32 1.0, %v2668_v62  ;;  %v1515_v29 = vmul.f32 1.442695, %v1501_v25 }
 0x91b   :  { %v1519_v51 = vadd.f32 1.0, %v2670_v28  ;;  %2679 = vpow2.f32 %v1517_v26 }
 0x91c   :  { %2681 = vrcp.f32 %v1520_v0 }
 0x91d   :  { %v2672_v4 = vpop.eup %2671  ;;  %2683 = vrcp.f32 %v1519_v51 }
 0x91e   :  { %v2674_v6 = vpop.eup %2673  ;;  %v1522_v9 = vadd.f32 1.0, %v2672_v4  ;;  %2685 = vpow2.f32 %v1515_v29  ;;  %v1711_v4 = vlaneseq }
 0x91f   :  { %v1521_v10 = vadd.f32 1.0, %v2674_v6 }
 0x920   :  { %2687 = vrcp.f32 %v1522_v9  ;;  %v1712_v6 = vand.u32 127, %v1711_v4 }
 0x921   :  { %v2676_v59 = vpop.eup %2675  ;;  %2689 = vrcp.f32 %v1521_v10 }
 0x922   :  { %v2678_v12 = vpop.eup %2677  ;;  %v1524_v13 = vadd.f32 1.0, %v2676_v59  ;;  %vm1713_vm1 = vcmp.lt.s32.totalorder %v1712_v6, 8 }
 0x923   :  { %v1523_v16 = vadd.f32 1.0, %v2678_v12 }
 0x924   :  { %2691 = vrcp.f32 %v1524_v13 }
 0x925   :  { %v2680_v17 = vpop.eup %2679  ;;  %2693 = vrcp.f32 %v1523_v16 }
 0x926   :  { %v2682_v14 = vpop.eup %2681  ;;  %v1526_v32 = vadd.f32 1.0, %v2680_v17 }
 0x927   :  { %v2684_v39 = vpop.eup %2683  ;;  %v1544_v34 = vsub.f32 1.0, %v2682_v14  ;;  %v1560_v41 = vmul.f32 %v2682_v14, %v2893_v42 }
 0x928   :  { %v2686_v37 = vpop.eup %2685  ;;  %2695 = vrcp.f32 %v1526_v32  ;;  %v1543_v43 = vsub.f32 1.0, %v2684_v39  ;;  %v1559_v48 = vmul.f32 %v2684_v39, %v2903_v47 }
 0x929   :  { %v1525_v38 = vadd.f32 1.0, %v2686_v37  ;;  %v1552_v40 = vmul.f32 %v1544_v34, %v3386_v30 }
 0x92a   :  { %v2688_v31 = vpop.eup %2687  ;;  %v1551_v44 = vmul.f32 %v1543_v43, %v3388_v11 }
 0x92b   :  { %v2690_v61 = vpop.eup %2689  ;;  %2697 = vrcp.f32 %v1525_v38  ;;  %v1568_v46 = vadd.f32 %v1560_v41, %v1552_v40  ;;  %v1546_v53 = vsub.f32 1.0, %v2688_v31  ;;  %v1562_v52 = vmul.f32 %v2688_v31, %v2910_v54 }
 0x92c   :  { %v1567_v56 = vadd.f32 %v1559_v48, %v1551_v44  ;;  %v1545_v50 = vsub.f32 1.0, %v2690_v61  ;;  %v1561_v42 = vmul.f32 %v2690_v61, %v2914_v58 }
 0x92d   :  { %v1554_v45 = vmul.f32 %v1546_v53, %v3394_v20  ;;  %v1576_v11 = vmax.f32 %v1568_v46, 0.0 }
 0x92e   :  { %v2692_v1 = vpop.eup %2691  ;;  %v1575_v63 = vmax.f32 %v1567_v56, 0.0  ;;  %v1553_v30 = vmul.f32 %v1545_v50, %v3397_v35 }
 0x92f   :  { %v2694_v57 = vpop.eup %2693  ;;  %v1570_v2 = vadd.f32 %v1562_v52, %v1554_v45  ;;  %v1548_v47 = vsub.f32 1.0, %v2692_v1  ;;  %v1564_v20 = vmul.f32 %v2692_v1, %v2925_v3 }
 0x930   :  { %2351 = vmatprep.mubr.f32.mxu1 %v1575_v63  ;;  %v1569_v49 = vadd.f32 %v1561_v42, %v1553_v30  ;;  %v1547_v60 = vsub.f32 1.0, %v2694_v57  ;;  %v1563_v35 = vmul.f32 %v2694_v57, %v2932_v8 }
 0x931   :  { %2352 = vmatmul.mubr.f32.vlgmr.msra.gmra.mrb[24].mxu1 %v1576_v11  ;;  %v1556_v22 = vmul.f32 %v1548_v47, %v3404_v33  ;;  %v1578_v24 = vmax.f32 %v1570_v2, 0.0 }
 0x932   :  { %v2696_v21 = vpop.eup %2695  ;;  %v1577_v54 = vmax.f32 %v1569_v49, 0.0  ;;  %v1555_v15 = vmul.f32 %v1547_v60, %v3407_v36 }
 0x933   :  { %v1572_v58 = vadd.f32 %v1564_v20, %v1556_v22  ;;  %v1550_v5 = vsub.f32 1.0, %v2696_v21  ;;  %v1566_v3 = vmul.f32 %v2696_v21, %v2944_v18 }
 0x934   :  { %2354 = vmatprep.mubr.f32.mxu1 %v1577_v54  ;;  %v1571_v23 = vadd.f32 %v1563_v35, %v1555_v15 }
 0x935   :  { %v2698_v27 = vpop.eup %2697  ;;  %2355 = vmatmul.mubr.f32.gmra.mrb[26].mxu1 %v1578_v24  ;;  %v1558_v25 = vmul.f32 %v1550_v5, %v3414_v55  ;;  %v1580_v33 = vmax.f32 %v1572_v58, 0.0  ;;  %v1890_v55 = vld [vmem:[%s3579_s14] ss:$0 sm:$0xff] }
 0x936   :  { %v1579_v62 = vmax.f32 %v1571_v23, 0.0  ;;  %v1549_v26 = vsub.f32 1.0, %v2698_v27  ;;  %v1565_v36 = vmul.f32 %v2698_v27, %v2946_v19 }
 0x937   :  { %v1574_v8 = vadd.f32 %v1566_v3, %v1558_v25 }
 0x938   :  { %2357 = vmatprep.mubr.f32.mxu1 %v1579_v62  ;;  %v1557_v28 = vmul.f32 %v1549_v26, %v3417_v7 }
 0x939   :  { %2358 = vmatmul.mubr.f32.gmra.mrb[28].mxu1 %v1580_v33  ;;  %v1582_v51 = vmax.f32 %v1574_v8, 0.0 }
 0x93a   :  { %v1573_v0 = vadd.f32 %v1565_v36, %v1557_v28 }
 0x93c   :  { %v1581_v29 = vmax.f32 %v1573_v0, 0.0 }
 0x93e   :  { %2360 = vmatprep.mubr.f32.mxu1 %v1581_v29 }
 0x93f   :  { %2361 = vmatmul.mubr.f32.gmra.mrb[30].mxu1 %v1582_v51 }
 0xa04   :  { %v2353_v9 = vpop.f32.mrb[24].mxu1 }
 0xa05   :  { %v1678_v18 = vadd.f32 %v2353_v9, %v1890_v55  ;;  %v1672_v10 = vpop.f32.mrb[25].mxu1 }
 0xa06   :  { %v1673_v7 = vadd.f32 %v1890_v55, %v1672_v10 }
 0xa07   :  { %v1715_v19 = vsel %vm1713_vm1, %v1678_v18, -1e+30 }
 0xa08   :  { %1724 = vmax.xlane.f32.xlu1 %v1715_v19  ;;  %v2356_v59 = vpop.f32.mrb[26].mxu1  ;;  %v1714_v12 = vsel %vm1713_vm1, %v1673_v7, -1e+30 }
 0xa09   :  { %v1688_v13 = vadd.f32 %v2356_v59, %v1890_v55  ;;  %1722 = vmax.xlane.f32.xlu0 %v1714_v12  ;;  %v1682_v16 = vpop.f32.mrb[27].mxu1 }
 0xa0a   :  { %v1683_v17 = vadd.f32 %v1890_v55, %v1682_v16 }
 0xa0b   :  { %v1717_v14 = vsel %vm1713_vm1, %v1688_v13, -1e+30 }
 0xa0c   :  { %1728 = vmax.xlane.f32.xlu1 %v1717_v14  ;;  %v2359_v32 = vpop.f32.mrb[28].mxu1  ;;  %v1716_v39 = vsel %vm1713_vm1, %v1683_v17, -1e+30 }
 0xa0d   :  { %v1698_v34 = vadd.f32 %v2359_v32, %v1890_v55  ;;  %1726 = vmax.xlane.f32.xlu0 %v1716_v39  ;;  %v1692_v37 = vpop.f32.mrb[29].mxu1 }
 0xa0e   :  { %v1693_v43 = vadd.f32 %v1890_v55, %v1692_v37 }
 0xa0f   :  { %v1719_v38 = vsel %vm1713_vm1, %v1698_v34, -1e+30 }
 0xa10   :  { %1732 = vmax.xlane.f32.xlu1 %v1719_v38  ;;  %v1718_v40 = vsel %vm1713_vm1, %v1693_v43, -1e+30 }
 0xa11   :  { %1730 = vmax.xlane.f32.xlu0 %v1718_v40 }
 0xa12   :  { %v2362_v41 = vpop.f32.mrb[30].mxu1 }
 0xa13   :  { %v1708_v31 = vadd.f32 %v2362_v41, %v1890_v55  ;;  %v1702_v44 = vpop.f32.mrb[31].mxu1 }
 0xa14   :  { %v1703_v48 = vadd.f32 %v1890_v55, %v1702_v44 }
 0xa15   :  { %v1721_v61 = vsel %vm1713_vm1, %v1708_v31, -1e+30 }
 0xa16   :  { %1736 = vmax.xlane.f32.xlu1 %v1721_v61  ;;  %v1720_v46 = vsel %vm1713_vm1, %v1703_v48, -1e+30 }
 0xa17   :  { %1734 = vmax.xlane.f32.xlu0 %v1720_v46 }
 0xa95   :  { %v1725_v53 = vpop.xlane.xlu1 %1724 }
 0xa96   :  { %v3509_v56 = vsub.f32 %v1715_v19, %v1725_v53  ;;  %v1723_v50 = vpop.xlane.xlu0 %1722 }
 0xa97   :  { %v3511_v45 = vsub.f32 %v1714_v12, %v1723_v50 }
 0xa98   :  { %v1748_v52 = vmul.f32 1.442695, %v3509_v56 }
 0xa99   :  { %v1746_v1 = vmul.f32 1.442695, %v3511_v45  ;;  %v1729_v63 = vpop.xlane.xlu1 %1728 }
 0xa9a   :  { %2699 = vpow2.f32 %v1748_v52  ;;  %v3515_v30 = vsub.f32 %v1717_v14, %v1729_v63  ;;  %v1727_v42 = vpop.xlane.xlu0 %1726 }
 0xa9b   :  { %2701 = vpow2.f32 %v1746_v1  ;;  %v3517_v57 = vsub.f32 %v1716_v39, %v1727_v42 }
 0xa9c   :  { %v1752_v11 = vmul.f32 1.442695, %v3515_v30 }
 0xa9d   :  { %v1750_v2 = vmul.f32 1.442695, %v3517_v57  ;;  %v1733_v47 = vpop.xlane.xlu1 %1732 }
 0xa9e   :  { %2703 = vpow2.f32 %v1752_v11  ;;  %v3521_v49 = vsub.f32 %v1719_v38, %v1733_v47  ;;  %v1731_v60 = vpop.xlane.xlu0 %1730 }
 0xa9f   :  { %2705 = vpow2.f32 %v1750_v2  ;;  %v3523_v22 = vsub.f32 %v1718_v40, %v1731_v60 }
 0xaa0   :  { %v1756_v20 = vmul.f32 1.442695, %v3521_v49 }
 0xaa1   :  { %v1754_v21 = vmul.f32 1.442695, %v3523_v22 }
 0xaa2   :  { %2707 = vpow2.f32 %v1756_v20 }
 0xaa3   :  { %2709 = vpow2.f32 %v1754_v21  ;;  %v1737_v54 = vpop.xlane.xlu1 %1736 }
 0xaa4   :  { %v2700_v15 = vpop.eup %2699  ;;  %v3527_v35 = vsub.f32 %v1721_v61, %v1737_v54  ;;  %v1735_v24 = vpop.xlane.xlu0 %1734 }
 0xaa5   :  { %v2702_v58 = vpop.eup %2701  ;;  %v3529_v5 = vsub.f32 %v1720_v46, %v1735_v24  ;;  %1764 = vadd.xlane.f32.xlu1 %v2700_v15 }
 0xaa6   :  { %v1760_v23 = vmul.f32 1.442695, %v3527_v35  ;;  %1762 = vadd.xlane.f32.xlu0 %v2702_v58 }
 0xaa7   :  { %v1758_v27 = vmul.f32 1.442695, %v3529_v5 }
 0xaa8   :  { %v2704_v25 = vpop.eup %2703  ;;  %2711 = vpow2.f32 %v1760_v23 }
 0xaa9   :  { %v2706_v62 = vpop.eup %2705  ;;  %2713 = vpow2.f32 %v1758_v27  ;;  %1768 = vadd.xlane.f32.xlu1 %v2704_v25 }
 0xaaa   :  { %1766 = vadd.xlane.f32.xlu0 %v2706_v62 }
 0xaac   :  { %v2708_v26 = vpop.eup %2707 }
 0xaad   :  { %v2710_v33 = vpop.eup %2709  ;;  %1772 = vadd.xlane.f32.xlu1 %v2708_v26 }
 0xaae   :  { %1770 = vadd.xlane.f32.xlu0 %v2710_v33 }
 0xab2   :  { %v2712_v3 = vpop.eup %2711 }
 0xab3   :  { %v2714_v28 = vpop.eup %2713  ;;  %1776 = vadd.xlane.f32.xlu1 %v2712_v3 }
 0xab4   :  { %1774 = vadd.xlane.f32.xlu0 %v2714_v28 }
 0xb32   :  { %v1765_v36 = vpop.xlane.xlu1 %1764 }
 0xb33   :  { %2715 = vlog2.f32 %v1765_v36  ;;  %v1763_v8 = vpop.xlane.xlu0 %1762 }
 0xb34   :  { %2717 = vlog2.f32 %v1763_v8 }
 0xb36   :  { %v1769_v0 = vpop.xlane.xlu1 %1768 }
 0xb37   :  { %2719 = vlog2.f32 %v1769_v0  ;;  %v1767_v29 = vpop.xlane.xlu0 %1766 }
 0xb38   :  { %2721 = vlog2.f32 %v1767_v29 }
 0xb3a   :  { %v1773_v51 = vpop.xlane.xlu1 %1772 }
 0xb3b   :  { %2723 = vlog2.f32 %v1773_v51  ;;  %v1771_v4 = vpop.xlane.xlu0 %1770 }
 0xb3c   :  { %2725 = vlog2.f32 %v1771_v4 }
 0xb3d   :  { %v2716_v6 = vpop.eup %2715 }
 0xb3e   :  { %v2718_v55 = vpop.eup %2717  ;;  %v1781_v9 = vmul.f32 0.6931472, %v2716_v6 }
 0xb3f   :  { %v1779_v18 = vmul.f32 0.6931472, %v2718_v55 }
 0xb40   :  { %v1795_v10 = vsub.f32 %v3509_v56, %v1781_v9  ;;  %v1777_v7 = vpop.xlane.xlu1 %1776 }
 0xb41   :  { %v2720_v19 = vpop.eup %2719  ;;  %v1794_v59 = vsub.f32 %v3511_v45, %v1779_v18  ;;  %2727 = vlog2.f32 %v1777_v7  ;;  %v1775_v12 = vpop.xlane.xlu0 %1774 }
 0xb42   :  { %v2722_v13 = vpop.eup %2721  ;;  %1803 = vst [vmem:[%s3580_s15 + $0x8] sm:$0xff] %v1795_v10  ;;  %v1785_v16 = vmul.f32 0.6931472, %v2720_v19  ;;  %2729 = vlog2.f32 %v1775_v12 }
 0xb43   :  { %1802 = vst [vmem:[%s3580_s15] sm:$0xff] %v1794_v59  ;;  %v1783_v17 = vmul.f32 0.6931472, %v2722_v13 }
 0xb44   :  { %v1797_v14 = vsub.f32 %v3515_v30, %v1785_v16 }
 0xb45   :  { %v2724_v32 = vpop.eup %2723  ;;  %v1796_v39 = vsub.f32 %v3517_v57, %v1783_v17 }
 0xb46   :  { %v2726_v34 = vpop.eup %2725  ;;  %1805 = vst [vmem:[%s3580_s15 + $0x18] sm:$0xff] %v1797_v14  ;;  %v1789_v37 = vmul.f32 0.6931472, %v2724_v32 }
 0xb47   :  { %1804 = vst [vmem:[%s3580_s15 + $0x10] sm:$0xff] %v1796_v39  ;;  %v1787_v43 = vmul.f32 0.6931472, %v2726_v34 }
 0xb48   :  { %v1799_v38 = vsub.f32 %v3521_v49, %v1789_v37 }
 0xb49   :  { %v1798_v40 = vsub.f32 %v3523_v22, %v1787_v43 }
 0xb4a   :  { %1807 = vst [vmem:[%s3580_s15 + $0x28] sm:$0xff] %v1799_v38 }
 0xb4b   :  { %v2728_v41 = vpop.eup %2727  ;;  %1806 = vst [vmem:[%s3580_s15 + $0x20] sm:$0xff] %v1798_v40 }
 0xb4c   :  { %v2730_v31 = vpop.eup %2729  ;;  %v1793_v44 = vmul.f32 0.6931472, %v2728_v41 }
 0xb4d   :  { %v1791_v48 = vmul.f32 0.6931472, %v2730_v31 }
 0xb4e   :  { %v1801_v61 = vsub.f32 %v3527_v35, %v1793_v44 }
 0xb4f   :  { %v1800_v46 = vsub.f32 %v3529_v5, %v1791_v48 }
 0xb50   :  { %1809 = vst [vmem:[%s3580_s15 + $0x38] sm:$0xff] %v1801_v61 }
 0xb51   :  { %1808 = vst [vmem:[%s3580_s15 + $0x30] sm:$0xff] %v1800_v46 }

</bundles_post_ra>
